<compile_context>
chip_gen: v7x
topology: tpu7x:2x2x1
jax: 0.10.0
libtpu: 0.0.40
codegen_flags: <defaults>
</compile_context>

<pallas_src>
import functools

import jax
import jax.numpy as jnp
from jax.experimental import pallas as pl
from jax.experimental.pallas import tpu as pltpu


def _round_up(x, m):
    return ((x + m - 1) // m) * m


def student_kernel(z_ref, w1_ref, b1_ref, w2_ref, b2_ref, out_ref):
    # z:(TB,L) f32   w1:(L,Hp) bf16   b1:(1,Hp) f32
    # w2:(Hp,O) bf16 b2:(1,O)  f32    out:(TB,O) f32
    z = z_ref[...].astype(w1_ref.dtype)  # f32 -> bf16 on the VPU (hidden under MXU/DMA)

    # Linear 1 (bf16 MXU, f32 accumulate) + bias + ReLU (f32 VPU)
    h = jnp.dot(z, w1_ref[...], preferred_element_type=jnp.float32) + b1_ref[...]
    h = jnp.maximum(h, 0.0)

    # Linear 2 (bf16 MXU, f32 accumulate) + bias
    logits = (
        jnp.dot(h.astype(w2_ref.dtype), w2_ref[...],
                preferred_element_type=jnp.float32)
        + b2_ref[...]
    )

    # Numerically stable softmax over the (unpadded) feature axis, all in f32.
    m = jnp.max(logits, axis=1, keepdims=True)
    e = jnp.exp(logits - m)
    denom = jnp.sum(e, axis=1, keepdims=True)
    out_ref[...] = (e / denom).astype(out_ref.dtype)


def prepare_params(w1, b1, w2, b2, *, compute_dtype=jnp.bfloat16):
    """Zero-pad hidden_dim to lane width (128) once, cast matmul weights to bf16,
    and pre-shape biases to (1, dim). output_dim is NOT padded."""
    latent_dim, hidden_dim = w1.shape
    output_dim = w2.shape[1]
    h_pad = _round_up(hidden_dim, 128)

    w1p = jnp.pad(w1, ((0, 0), (0, h_pad - hidden_dim))).astype(compute_dtype)
    b1p = jnp.pad(b1, (0, h_pad - hidden_dim)).reshape(1, h_pad).astype(jnp.float32)
    w2p = jnp.pad(w2, ((0, h_pad - hidden_dim), (0, 0))).astype(compute_dtype)
    b2p = b2.reshape(1, output_dim).astype(jnp.float32)
    return (w1p, b1p, w2p, b2p)


def _jax_fallback(z, params):
    """Plain-JAX path for tiny batches (Pallas launch overhead dominates)."""
    w1, b1, w2, b2 = params
    zc = z.astype(w1.dtype)
    h = jnp.maximum(jnp.dot(zc, w1, preferred_element_type=jnp.float32) + b1, 0.0)
    logits = jnp.dot(h.astype(w2.dtype), w2, preferred_element_type=jnp.float32) + b2
    return jax.nn.softmax(logits, axis=1)


def _pick_tb(B, tb_max=1024, prefer_blocks=2):
    """Pick a batch tile that (a) divides B exactly (no pad copy of z),
    (b) is a multiple of 8 (sublane rule), and (c) gives >= `prefer_blocks`
    grid steps when possible so both TensorCores get work on v7x, while
    staying large for v5e/v6e's single core."""
    if B <= 8 or B % 8 != 0:
        return B  # single block == full array: always a legal block shape
    target = min(tb_max, -(-B // prefer_blocks))
    tb = max(8, (target // 8) * 8)
    while tb > 8 and B % tb != 0:
        tb -= 8
    return tb if B % tb == 0 else B


@functools.partial(jax.jit, static_argnames=("tb_max", "min_pallas_rows"))
def student_forward(z, params, *, tb_max=1024, min_pallas_rows=256):
    """Fused decoder + softmax. Batch-tiled Pallas kernel with resident weights."""
    w1, b1, w2, b2 = params
    B, L = z.shape
    if B < min_pallas_rows:
        return _jax_fallback(z, params)

    h_pad = w1.shape[1]
    output_dim = w2.shape[1]

    tb = _pick_tb(B, tb_max=tb_max)
    n_blocks = pl.cdiv(B, tb)  # tb divides B (or tb == B), so no padding of z

    bytes_accessed = (
        z.size * z.dtype.itemsize
        + sum(p.size * p.dtype.itemsize for p in (w1, b1, w2, b2))
        + B * output_dim * 4
    )
    cost = pl.CostEstimate(
        flops=2 * B * (L * h_pad + h_pad * output_dim),
        transcendentals=B * output_dim,            # exp in the softmax
        bytes_accessed=bytes_accessed,
    )

    return pl.pallas_call(
        student_kernel,
        out_shape=jax.ShapeDtypeStruct((B, output_dim), jnp.float32),
        grid=(n_blocks,),
        in_specs=[
            pl.BlockSpec((tb, L), lambda i: (i, 0)),            # z tile, pipelined
            pl.BlockSpec((L, h_pad), lambda i: (0, 0)),         # w1, VMEM-resident
            pl.BlockSpec((1, h_pad), lambda i: (0, 0)),         # b1, VMEM-resident
            pl.BlockSpec((h_pad, output_dim), lambda i: (0, 0)),# w2, VMEM-resident
            pl.BlockSpec((1, output_dim), lambda i: (0, 0)),    # b2, VMEM-resident
        ],
        out_specs=pl.BlockSpec((tb, output_dim), lambda i: (i, 0)),  # unpadded out
        compiler_params=pltpu.CompilerParams(
            dimension_semantics=("parallel",),  # batch tiles independent (v7x: 2 TCs)
        ),
        cost_estimate=cost,
    )(z, w1, b1, w2, b2)


def init_params(key, latent_dim, hidden_dim, output_dim):
    """PyTorch nn.Linear default init: U(-1/sqrt(fan_in), 1/sqrt(fan_in))."""
    k1, k2, k3, k4 = jax.random.split(key, 4)
    bound1 = 1.0 / jnp.sqrt(latent_dim)
    bound2 = 1.0 / jnp.sqrt(hidden_dim)
    w1 = jax.random.uniform(k1, (latent_dim, hidden_dim), jnp.float32, -bound1, bound1)
    b1 = jax.random.uniform(k2, (hidden_dim,), jnp.float32, -bound1, bound1)
    w2 = jax.random.uniform(k3, (hidden_dim, output_dim), jnp.float32, -bound2, bound2)
    b2 = jax.random.uniform(k4, (output_dim,), jnp.float32, -bound2, bound2)
    return w1, b1, w2, b2


if __name__ == "__main__":
    # Model dims match the module (latent -> 64 -> output, softmax over dim=1).
    # batch=1024 exercises the batch-tiled grid (tile picker -> 2 blocks of 512)
    # while total data stays tiny (< 200 KiB).
    batch, latent_dim, hidden_dim, output_dim = 1024, 32, 64, 16

    key = jax.random.PRNGKey(0)
    k_z, k_p = jax.random.split(key)
    z = jax.random.normal(k_z, (batch, latent_dim), jnp.float32)
    w1, b1, w2, b2 = init_params(k_p, latent_dim, hidden_dim, output_dim)

    params = prepare_params(w1, b1, w2, b2)
    out = student_forward(z, params)
    out = jax.block_until_ready(out)

    # Pure-f32 reference of the original module semantics.
    h_ref = jnp.maximum(z @ w1 + b1, 0.0)
    logits_ref = h_ref @ w2 + b2
    ref = jax.nn.softmax(logits_ref, axis=1)

    assert out.shape == (batch, output_dim)
    # bf16 matmuls vs the f32 reference -> loose-but-meaningful tolerance.
    assert jnp.allclose(out, ref, atol=1e-2, rtol=5e-2), "mismatch vs f32 reference"
    assert jnp.allclose(jnp.sum(out, axis=1), 1.0, atol=1e-3), "rows do not sum to 1"

    print("KERNEL_OK")
</pallas_src>

<mosaic_0001>
module attributes {stable_mosaic.version = 11 : i64} {
  func.func @student_kernel(%arg0: i32, %arg1: memref<512x32xf32, #tpu.memory_space<vmem>>, %arg2: memref<32x128xbf16, #tpu.memory_space<vmem>>, %arg3: memref<1x128xf32, #tpu.memory_space<vmem>>, %arg4: memref<128x16xbf16, #tpu.memory_space<vmem>>, %arg5: memref<1x16xf32, #tpu.memory_space<vmem>>, %arg6: memref<512x16xf32, #tpu.memory_space<vmem>>) attributes {dimension_semantics = [#tpu.dimension_semantics<parallel>], iteration_bounds = array<i64: 2>, scalar_prefetch = 0 : i64, scratch_operands = 0 : i64, tpu.core_type = #tpu.core_type<tc>, window_params = [{transform_indices = @transform_0, window_bounds = array<i64: 512, 32>}, {pipeline_mode = #tpu.pipeline_mode<synchronous>, transform_indices = @transform_1, window_bounds = array<i64: 32, 128>}, {pipeline_mode = #tpu.pipeline_mode<synchronous>, transform_indices = @transform_2, window_bounds = array<i64: 1, 128>}, {pipeline_mode = #tpu.pipeline_mode<synchronous>, transform_indices = @transform_3, window_bounds = array<i64: 128, 16>}, {pipeline_mode = #tpu.pipeline_mode<synchronous>, transform_indices = @transform_4, window_bounds = array<i64: 1, 16>}, {transform_indices = @transform_5, window_bounds = array<i64: 512, 16>}]} {
    %c0 = arith.constant 0 : index
    %c0_0 = arith.constant 0 : index
    %0 = vector.load %arg1[%c0, %c0_0] : memref<512x32xf32, #tpu.memory_space<vmem>>, vector<512x32xf32>
    %1 = arith.truncf %0 : vector<512x32xf32> to vector<512x32xbf16>
    %c0_1 = arith.constant 0 : index
    %c0_2 = arith.constant 0 : index
    %2 = vector.load %arg2[%c0_1, %c0_2] : memref<32x128xbf16, #tpu.memory_space<vmem>>, vector<32x128xbf16>
    %cst = arith.constant dense<0.000000e+00> : vector<512x128xf32>
    %3 = tpu.matmul %1, %2, %cst {dimension_numbers = #tpu.dot_dimension_numbers<[1], [0], [0], [1], [0, 0, 1, 1], [], []>} : vector<512x32xbf16>, vector<32x128xbf16>, vector<512x128xf32> -> vector<512x128xf32>
    %c0_3 = arith.constant 0 : index
    %c0_4 = arith.constant 0 : index
    %4 = vector.load %arg3[%c0_3, %c0_4] : memref<1x128xf32, #tpu.memory_space<vmem>>, vector<1x128xf32>
    %5 = vector.broadcast %4 : vector<1x128xf32> to vector<512x128xf32>
    %6 = arith.addf %3, %5 : vector<512x128xf32>
    %cst_5 = arith.constant 0.000000e+00 : f32
    %7 = vector.broadcast %cst_5 : f32 to vector<512x128xf32>
    %8 = arith.maximumf %6, %7 : vector<512x128xf32>
    %9 = arith.truncf %8 : vector<512x128xf32> to vector<512x128xbf16>
    %c0_6 = arith.constant 0 : index
    %c0_7 = arith.constant 0 : index
    %10 = vector.load %arg4[%c0_6, %c0_7] : memref<128x16xbf16, #tpu.memory_space<vmem>>, vector<128x16xbf16>
    %cst_8 = arith.constant dense<0.000000e+00> : vector<512x16xf32>
    %11 = tpu.matmul %9, %10, %cst_8 {dimension_numbers = #tpu.dot_dimension_numbers<[1], [0], [0], [1], [0, 0, 1, 1], [], []>} : vector<512x128xbf16>, vector<128x16xbf16>, vector<512x16xf32> -> vector<512x16xf32>
    %c0_9 = arith.constant 0 : index
    %c0_10 = arith.constant 0 : index
    %12 = vector.load %arg5[%c0_9, %c0_10] : memref<1x16xf32, #tpu.memory_space<vmem>>, vector<1x16xf32>
    %13 = vector.broadcast %12 : vector<1x16xf32> to vector<512x16xf32>
    %14 = arith.addf %11, %13 : vector<512x16xf32>
    %cst_11 = arith.constant dense<0xFF800000> : vector<512xf32>
    %15 = vector.multi_reduction <maximumf>, %14, %cst_11 [1] : vector<512x16xf32> to vector<512xf32>
    %16 = vector.shape_cast %15 : vector<512xf32> to vector<512x1xf32>
    %17 = vector.broadcast %16 : vector<512x1xf32> to vector<512x16xf32>
    %18 = arith.subf %14, %17 : vector<512x16xf32>
    %19 = math.exp %18 : vector<512x16xf32>
    %cst_12 = arith.constant dense<0.000000e+00> : vector<512xf32>
    %20 = vector.multi_reduction <add>, %19, %cst_12 [1] : vector<512x16xf32> to vector<512xf32>
    %21 = vector.shape_cast %20 : vector<512xf32> to vector<512x1xf32>
    %22 = vector.broadcast %21 : vector<512x1xf32> to vector<512x16xf32>
    %23 = arith.divf %19, %22 : vector<512x16xf32>
    %c0_13 = arith.constant 0 : index
    %c0_14 = arith.constant 0 : index
    %24 = vector.load %arg6[%c0_13, %c0_14] : memref<512x16xf32, #tpu.memory_space<vmem>>, vector<512x16xf32>
    tpu.vector_store %arg6[%c0_13, %c0_14], %23 {strides = array<i32>} : memref<512x16xf32, #tpu.memory_space<vmem>>, vector<512x16xf32>,
    return
  }
  func.func @transform_0(%arg0: i32) -> (i32, i32) {
    %c0_i32 = arith.constant 0 : i32
    %c0_i32_0 = arith.constant 0 : i32
    return %arg0, %c0_i32 : i32, i32
  }
  func.func @transform_1(%arg0: i32) -> (i32, i32) {
    %c0_i32 = arith.constant 0 : i32
    %c0_i32_0 = arith.constant 0 : i32
    %c0_i32_1 = arith.constant 0 : i32
    return %c0_i32, %c0_i32_0 : i32, i32
  }
  func.func @transform_2(%arg0: i32) -> (i32, i32) {
    %c0_i32 = arith.constant 0 : i32
    %c0_i32_0 = arith.constant 0 : i32
    %c0_i32_1 = arith.constant 0 : i32
    return %c0_i32, %c0_i32_0 : i32, i32
  }
  func.func @transform_3(%arg0: i32) -> (i32, i32) {
    %c0_i32 = arith.constant 0 : i32
    %c0_i32_0 = arith.constant 0 : i32
    %c0_i32_1 = arith.constant 0 : i32
    return %c0_i32, %c0_i32_0 : i32, i32
  }
  func.func @transform_4(%arg0: i32) -> (i32, i32) {
    %c0_i32 = arith.constant 0 : i32
    %c0_i32_0 = arith.constant 0 : i32
    %c0_i32_1 = arith.constant 0 : i32
    return %c0_i32, %c0_i32_0 : i32, i32
  }
  func.func @transform_5(%arg0: i32) -> (i32, i32) {
    %c0_i32 = arith.constant 0 : i32
    %c0_i32_0 = arith.constant 0 : i32
    return %arg0, %c0_i32 : i32, i32
  }
}

</mosaic_0001>

<bundles_post_ra>
// kernel: student_forward.1
= control target key start
LH: loop header
LB: loop body
LE: loop exit
PB: predicated region body
PF: predicated region fallthrough
CT: control target
= control target key end

     0   :  { %s2620_s18 = smov 0   ;;  %s3680_s0 = inlined_call_operand.vmem [shape: f32[1024,32], index: 0, kind: input, shape index: {}]   ;;  %s3681_s1 = inlined_call_operand.vmem [shape: bf16[32,128], index: 1, kind: input, shape index: {}]   ;;  %s3682_s2 = inlined_call_operand.vmem [shape: f32[1,128], index: 2, kind: input, shape index: {}]   ;;  %s3683_s3 = inlined_call_operand.vmem [shape: bf16[128,16], index: 3, kind: input, shape index: {}]   ;;  %s3684_s4 = inlined_call_operand.vmem [shape: f32[1,16], index: 4, kind: input, shape index: {}]   ;;  %s3685_s5 = inlined_call_operand.vmem [shape: f32[1024,16], index: 5, kind: output, shape index: {}]  }
   0x1 LB: > { %s2015_s19 = sadd.s32 4294967295, %s2588_s18   ;;  %p2019_p0 = scmp.ge.s32.totalorder %s2588_s18, 1  ;;  %s2588_s18 = sphi %s2620_s18, %s15_s18  }
   0x2   : > { %p188_p1 = scmp.lt.s32.totalorder %s2588_s18, 3 }
   0x4   : > { %p189_p2 = pnand %p2019_p0, %p188_p1 }
   0x6   : > { %192 = sbr.rel (%p189_p2) target bundleno = 904 (0x388), region = 40 }
   0xd   : > { %v2316_v0 = vld [vmem:[%s3681_s1] sm:$0xff]   ;;  %s2020_s22 = sshll.u32 %s2015_s19, 6  ;;  %v2317_v1 = vld [vmem:[%s3681_s1 + $0x8] sm:$0xff]   ;;  %v2320_v4 = vld [vmem:[%s3683_s3 + $0x10] sm:$0xff]   ;;  %vm348_vm0 = vcmask 261120   ;;  %vm1190_vm1 = vcmask 130048  }
   0xe   : > { %p217_p3 = scmp.lt.s32.totalorder %s2020_s22, 127  ;;  %2144 = vmatprep.subr.bf16.mxu0 %v2316_v0  ;;  %v2318_v2 = vld [vmem:[%s3683_s3] sm:$0xff]   ;;  %v2319_v3 = vld [vmem:[%s3683_s3 + $0x8] sm:$0xff]   ;;  %v2321_v16 = vld [vmem:[%s3683_s3 + $0x18] sm:$0xff]  }
   0xf   : > { %2145 = vmatpush3.bf16.msra.mxu0 %v2316_v0  ;;  %2292 = vmatprep.subr.bf16.mxu1 %v2318_v2  ;;  %v2322_v21 = vld [vmem:[%s3683_s3 + $0x20] sm:$0xff]   ;;  %v2323_v32 = vld [vmem:[%s3683_s3 + $0x28] sm:$0xff]   ;;  %v2324_v33 = vld [vmem:[%s3683_s3 + $0x30] sm:$0xff]  }
  0x10   : > { %s3759_s22 = smov (!%p217_p3, %s2020_s22), 127  ;;  %2146 = vmatprep.subr.bf16.mxu0 %v2317_v1  ;;  %2300 = vmatpush3.bf16.msra.mxu1 %v2318_v2  ;;  %v2325_v36 = vld [vmem:[%s3683_s3 + $0x38] sm:$0xff]  }
  0x11   : > { %s2021_s29 = sshll.u32 %s3759_s22, 3  ;;  %2293 = vmatprep.subr.bf16.mxu1 %v2319_v3 }
  0x12   : > { %s2648_s7 = scalar_lea.vmem %s3680_s0, %s2021_s29  ;;  %s3483_s28 = scalar_lea.vmem %s3685_s5, %s2021_s29 }
  0x13   : > { %2147 = vmatpush3.bf16.msra.mxu0 %v2317_v1  ;;  %v229_v5 = vld [vmem:[%s2648_s7] sm:$0xff]  ;;  %v230_v6 = vld [vmem:[%s2648_s7 + $0x8] sm:$0xff]  ;;  %v231_v7 = vld [vmem:[%s2648_s7 + $0x10] sm:$0xff] }
  0x14   : > { %v293_v8 = vpack.c.bf16 %v230_v6, %v229_v5  ;;  %v232_v9 = vld [vmem:[%s2648_s7 + $0x18] sm:$0xff]  ;;  %v233_v10 = vld [vmem:[%s2648_s7 + $0x20] sm:$0xff]  ;;  %v234_v11 = vld [vmem:[%s2648_s7 + $0x28] sm:$0xff]  ;;  %2212 = vmatprep.subr.bf16.mxu0 %v2318_v2  ;;  %2301 = vmatpush3.bf16.msra.mxu1 %v2319_v3 }
  0x15   : > { %v294_v12 = vpack.c.bf16 %v232_v9, %v231_v7  ;;  %v295_v13 = vpack.c.bf16 %v234_v11, %v233_v10  ;;  %2294 = vmatprep.subr.bf16.mxu1 %v2320_v4  ;;  %v235_v14 = vld [vmem:[%s2648_s7 + $0x30] sm:$0xff]  ;;  %v236_v15 = vld [vmem:[%s2648_s7 + $0x38] sm:$0xff]  ;;  %v237_v17 = vld [vmem:[%s2648_s7 + $0x40] sm:$0xff] }
  0x16   : > { %2148 = vmatprep.mubr.msk.bf16.mxu0 %vm348_vm0, %v293_v8  ;;  %v238_v18 = vld [vmem:[%s2648_s7 + $0x48] sm:$0xff]  ;;  %v296_v19 = vpack.c.bf16 %v236_v15, %v235_v14  ;;  %v239_v22 = vld [vmem:[%s2648_s7 + $0x50] sm:$0xff]  ;;  %v240_v23 = vld [vmem:[%s2648_s7 + $0x58] sm:$0xff] }
  0x17   : > { %2149 = vmatmul.mubr.msk.bf16.vlgmr.msra.gmra.mrb[0].mxu0 %vm348_vm0, %v294_v12  ;;  %v297_v20 = vpack.c.bf16 %v238_v18, %v237_v17  ;;  %v241_v24 = vld [vmem:[%s2648_s7 + $0x60] sm:$0xff]  ;;  %v242_v25 = vld [vmem:[%s2648_s7 + $0x68] sm:$0xff]  ;;  %v298_v26 = vpack.c.bf16 %v240_v23, %v239_v22  ;;  %v243_v28 = vld [vmem:[%s2648_s7 + $0x70] sm:$0xff] }
  0x18   : > { %2152 = vmatprep.mubr.msk.bf16.mxu0 %vm348_vm0, %v295_v13  ;;  %2213 = vmatpush3.bf16.msra.mxu0 %v2318_v2  ;;  %v299_v27 = vpack.c.bf16 %v242_v25, %v241_v24  ;;  %v244_v29 = vld [vmem:[%s2648_s7 + $0x78] sm:$0xff]  ;;  %v245_v30 = vld [vmem:[%s2648_s7 + $0x80] sm:$0xff]  ;;  %v246_v31 = vld [vmem:[%s2648_s7 + $0x88] sm:$0xff] }
  0x19   : > { %2214 = vmatprep.subr.bf16.mxu0 %v2319_v3  ;;  %2302 = vmatpush3.bf16.msra.mxu1 %v2320_v4  ;;  %v300_v34 = vpack.c.bf16 %v244_v29, %v243_v28  ;;  %v301_v35 = vpack.c.bf16 %v246_v31, %v245_v30  ;;  %v247_v37 = vld [vmem:[%s2648_s7 + $0x90] sm:$0xff]  ;;  %v248_v38 = vld [vmem:[%s2648_s7 + $0x98] sm:$0xff]  ;;  %v249_v39 = vld [vmem:[%s2648_s7 + $0xa0] sm:$0xff] }
  0x1a   : > { %2295 = vmatprep.subr.bf16.mxu1 %v2321_v16  ;;  %v250_v40 = vld [vmem:[%s2648_s7 + $0xa8] sm:$0xff]  ;;  %v302_v41 = vpack.c.bf16 %v248_v38, %v247_v37  ;;  %v251_v43 = vld [vmem:[%s2648_s7 + $0xb0] sm:$0xff]  ;;  %v252_v44 = vld [vmem:[%s2648_s7 + $0xb8] sm:$0xff] }
  0x1b   : > { %v303_v42 = vpack.c.bf16 %v250_v40, %v249_v39  ;;  %v253_v45 = vld [vmem:[%s2648_s7 + $0xc0] sm:$0xff]  ;;  %v254_v46 = vld [vmem:[%s2648_s7 + $0xc8] sm:$0xff]  ;;  %v304_v47 = vpack.c.bf16 %v252_v44, %v251_v43  ;;  %v255_v49 = vld [vmem:[%s2648_s7 + $0xd0] sm:$0xff] }
  0x1c   : > { %2215 = vmatpush3.bf16.msra.mxu0 %v2319_v3  ;;  %v305_v48 = vpack.c.bf16 %v254_v46, %v253_v45  ;;  %v256_v50 = vld [vmem:[%s2648_s7 + $0xd8] sm:$0xff]  ;;  %v257_v51 = vld [vmem:[%s2648_s7 + $0xe0] sm:$0xff]  ;;  %v258_v52 = vld [vmem:[%s2648_s7 + $0xe8] sm:$0xff] }
  0x1d   : > { %2216 = vmatprep.subr.bf16.mxu0 %v2320_v4  ;;  %2303 = vmatpush3.bf16.msra.mxu1 %v2321_v16  ;;  %v306_v53 = vpack.c.bf16 %v256_v50, %v255_v49  ;;  %v307_v54 = vpack.c.bf16 %v258_v52, %v257_v51  ;;  %v259_v55 = vld [vmem:[%s2648_s7 + $0xf0] sm:$0xff]  ;;  %v260_v56 = vld [vmem:[%s2648_s7 + $0xf8] sm:$0xff]  ;;  %v261_v57 = vld [vmem:[%s2648_s7 + $0x100] sm:$0xff] }
  0x1e   : > { %2296 = vmatprep.subr.bf16.mxu1 %v2322_v21  ;;  %v262_v58 = vld [vmem:[%s2648_s7 + $0x108] sm:$0xff]  ;;  %v308_v59 = vpack.c.bf16 %v260_v56, %v259_v55  ;;  %v263_v61 = vld [vmem:[%s2648_s7 + $0x110] sm:$0xff]  ;;  %v264_v62 = vld [vmem:[%s2648_s7 + $0x118] sm:$0xff] }
  0x1f   : > { %2153 = vmatmul.mubr.msk.bf16.gmra.mrb[4].mxu0 %vm348_vm0, %v296_v19  ;;  %v309_v60 = vpack.c.bf16 %v262_v58, %v261_v57  ;;  %v265_v63 = vld [vmem:[%s2648_s7 + $0x120] sm:$0xff]  ;;  %v266_v0 = vld [vmem:[%s2648_s7 + $0x128] sm:$0xff]  ;;  %v310_v1 = vpack.c.bf16 %v264_v62, %v263_v61  ;;  %v267_v3 = vld [vmem:[%s2648_s7 + $0x130] sm:$0xff] }
  0x20   : > { %2156 = vmatprep.mubr.msk.bf16.mxu0 %vm348_vm0, %v297_v20  ;;  %2217 = vmatpush3.bf16.msra.mxu0 %v2320_v4  ;;  %v311_v2 = vpack.c.bf16 %v266_v0, %v265_v63  ;;  %v268_v4 = vld [vmem:[%s2648_s7 + $0x138] sm:$0xff]  ;;  %v269_v5 = vld [vmem:[%s2648_s7 + $0x140] sm:$0xff]  ;;  %v270_v6 = vld [vmem:[%s2648_s7 + $0x148] sm:$0xff] }
  0x21   : > { %2218 = vmatprep.subr.bf16.mxu0 %v2321_v16  ;;  %2304 = vmatpush3.bf16.msra.mxu1 %v2322_v21  ;;  %v312_v7 = vpack.c.bf16 %v268_v4, %v267_v3  ;;  %v313_v8 = vpack.c.bf16 %v270_v6, %v269_v5  ;;  %v271_v9 = vld [vmem:[%s2648_s7 + $0x150] sm:$0xff]  ;;  %v272_v10 = vld [vmem:[%s2648_s7 + $0x158] sm:$0xff]  ;;  %v273_v11 = vld [vmem:[%s2648_s7 + $0x160] sm:$0xff] }
  0x22   : > { %2297 = vmatprep.subr.bf16.mxu1 %v2323_v32  ;;  %v274_v12 = vld [vmem:[%s2648_s7 + $0x168] sm:$0xff]  ;;  %v314_v13 = vpack.c.bf16 %v272_v10, %v271_v9  ;;  %v275_v15 = vld [vmem:[%s2648_s7 + $0x170] sm:$0xff]  ;;  %v277_v17 = vld [vmem:[%s2648_s7 + $0x180] sm:$0xff] }
  0x23   : > { %v315_v14 = vpack.c.bf16 %v274_v12, %v273_v11  ;;  %v278_v18 = vld [vmem:[%s2648_s7 + $0x188] sm:$0xff]  ;;  %v280_v22 = vld [vmem:[%s2648_s7 + $0x198] sm:$0xff]  ;;  %v281_v23 = vld [vmem:[%s2648_s7 + $0x1a0] sm:$0xff] }
  0x24   : > { %2219 = vmatpush3.bf16.msra.mxu0 %v2321_v16  ;;  %v276_v16 = vld [vmem:[%s2648_s7 + $0x178] sm:$0xff]  ;;  %v317_v20 = vpack.c.bf16 %v278_v18, %v277_v17  ;;  %v282_v24 = vld [vmem:[%s2648_s7 + $0x1a8] sm:$0xff]  ;;  %v285_v29 = vld [vmem:[%s2648_s7 + $0x1c0] sm:$0xff] }
  0x25   : > { %2220 = vmatprep.subr.bf16.mxu0 %v2322_v21  ;;  %2305 = vmatpush3.bf16.msra.mxu1 %v2323_v32  ;;  %v316_v19 = vpack.c.bf16 %v276_v16, %v275_v15  ;;  %v284_v28 = vld [vmem:[%s2648_s7 + $0x1b8] sm:$0xff]  ;;  %v286_v30 = vld [vmem:[%s2648_s7 + $0x1c8] sm:$0xff]  ;;  %v291_v39 = vld [vmem:[%s2648_s7 + $0x1f0] sm:$0xff] }
  0x26   : > { %2298 = vmatprep.subr.bf16.mxu1 %v2324_v33  ;;  %v292_v40 = vld [vmem:[%s2648_s7 + $0x1f8] sm:$0xff] }
  0x27   : > { %2157 = vmatmul.mubr.msk.bf16.gmra.mrb[8].mxu0 %vm348_vm0, %v298_v26  ;;  %v319_v26 = vpack.c.bf16 %v282_v24, %v281_v23 }
  0x28   : > { %2160 = vmatprep.mubr.msk.bf16.mxu0 %vm348_vm0, %v299_v27  ;;  %2221 = vmatpush3.bf16.msra.mxu0 %v2322_v21  ;;  %v279_v21 = vld [vmem:[%s2648_s7 + $0x190] sm:$0xff] }
  0x29   : > { %2222 = vmatprep.subr.bf16.mxu0 %v2323_v32  ;;  %2306 = vmatpush3.bf16.msra.mxu1 %v2324_v33  ;;  %v318_v25 = vpack.c.bf16 %v280_v22, %v279_v21  ;;  %v283_v27 = vld [vmem:[%s2648_s7 + $0x1b0] sm:$0xff] }
  0x2a   : > { %2299 = vmatprep.subr.bf16.mxu1 %v2325_v36  ;;  %v320_v31 = vpack.c.bf16 %v284_v28, %v283_v27 }
  0x2c   : > { %2223 = vmatpush3.bf16.msra.mxu0 %v2323_v32  ;;  %v321_v32 = vpack.c.bf16 %v286_v30, %v285_v29 }
  0x2d   : > { %2224 = vmatprep.subr.bf16.mxu0 %v2324_v33  ;;  %2307 = vmatpush3.bf16.msra.mxu1 %v2325_v36 }
  0x2f   : > { %2161 = vmatmul.mubr.msk.bf16.gmra.mrb[12].mxu0 %vm348_vm0, %v300_v34  ;;  %v288_v34 = vld [vmem:[%s2648_s7 + $0x1d8] sm:$0xff] }
  0x30   : > { %2164 = vmatprep.mubr.msk.bf16.mxu0 %vm348_vm0, %v301_v35  ;;  %2225 = vmatpush3.bf16.msra.mxu0 %v2324_v33  ;;  %v287_v33 = vld [vmem:[%s2648_s7 + $0x1d0] sm:$0xff]  ;;  %v289_v35 = vld [vmem:[%s2648_s7 + $0x1e0] sm:$0xff] }
  0x31   : > { %2226 = vmatprep.subr.bf16.mxu0 %v2325_v36  ;;  %v322_v37 = vpack.c.bf16 %v288_v34, %v287_v33 }
  0x34   : > { %2227 = vmatpush3.bf16.msra.mxu0 %v2325_v36  ;;  %v290_v36 = vld [vmem:[%s2648_s7 + $0x1e8] sm:$0xff] }
  0x35   : > { %v323_v38 = vpack.c.bf16 %v290_v36, %v289_v35 }
  0x37   : > { %2165 = vmatmul.mubr.msk.bf16.gmra.mrb[16].mxu0 %vm348_vm0, %v302_v41  ;;  %v324_v41 = vpack.c.bf16 %v292_v40, %v291_v39 }
  0x38   : > { %2168 = vmatprep.mubr.msk.bf16.mxu0 %vm348_vm0, %v303_v42  ;;  %v2767_v42 = vld [vmem:[%s3682_s2] ss:$0 sm:$0xff] }
  0x3f   : > { %2169 = vmatmul.mubr.msk.bf16.gmra.mrb[20].mxu0 %vm348_vm0, %v304_v47 }
  0x40   : > { %2172 = vmatprep.mubr.msk.bf16.mxu0 %vm348_vm0, %v305_v48 }
  0x47   : > { %2173 = vmatmul.mubr.msk.bf16.gmra.mrb[24].mxu0 %vm348_vm0, %v306_v53 }
  0x48   : > { %2176 = vmatprep.mubr.msk.bf16.mxu0 %vm348_vm0, %v307_v54 }
  0x4f   : > { %2177 = vmatmul.mubr.msk.bf16.gmra.mrb[28].mxu0 %vm348_vm0, %v308_v59 }
  0x50   : > { %2180 = vmatprep.mubr.msk.bf16.mxu0 %vm348_vm0, %v309_v60 }
  0x57   : > { %2181 = vmatmul.mubr.msk.bf16.gmra.mrb[32].mxu0 %vm348_vm0, %v310_v1 }
  0x58   : > { %2184 = vmatprep.mubr.msk.bf16.mxu0 %vm348_vm0, %v311_v2 }
  0x5f   : > { %2185 = vmatmul.mubr.msk.bf16.gmra.mrb[36].mxu0 %vm348_vm0, %v312_v7 }
  0x60   : > { %2188 = vmatprep.mubr.msk.bf16.mxu0 %vm348_vm0, %v313_v8 }
  0x67   : > { %2189 = vmatmul.mubr.msk.bf16.gmra.mrb[40].mxu0 %vm348_vm0, %v314_v13 }
  0x68   : > { %2192 = vmatprep.mubr.msk.bf16.mxu0 %vm348_vm0, %v315_v14 }
  0x6f   : > { %2193 = vmatmul.mubr.msk.bf16.gmra.mrb[44].mxu0 %vm348_vm0, %v316_v19 }
  0x70   : > { %2196 = vmatprep.mubr.msk.bf16.mxu0 %vm348_vm0, %v317_v20 }
  0x77   : > { %2197 = vmatmul.mubr.msk.bf16.gmra.mrb[48].mxu0 %vm348_vm0, %v318_v25 }
  0x78   : > { %2200 = vmatprep.mubr.msk.bf16.mxu0 %vm348_vm0, %v319_v26 }
  0x7f   : > { %2201 = vmatmul.mubr.msk.bf16.gmra.mrb[52].mxu0 %vm348_vm0, %v320_v31 }
  0x80   : > { %2204 = vmatprep.mubr.msk.bf16.mxu0 %vm348_vm0, %v321_v32 }
  0x87   : > { %2205 = vmatmul.mubr.msk.bf16.gmra.mrb[56].mxu0 %vm348_vm0, %v322_v37 }
  0x88   : > { %2208 = vmatprep.mubr.msk.bf16.mxu0 %vm348_vm0, %v323_v38 }
  0x8f   : > { %2209 = vmatmul.mubr.msk.bf16.gmra.mrb[60].mxu0 %vm348_vm0, %v324_v41 }
  0xea   : > { %v2150_v43 = vpop.f32.mrb[0].mxu0 }
  0xeb   : > { %v488_v44 = vadd.f32 %v2150_v43, %v2767_v42  ;;  %v479_v45 = vpop.f32.mrb[1].mxu0 }
  0xec   : > { %v480_v46 = vadd.f32 %v2767_v42, %v479_v45  ;;  %v2151_v47 = vpop.f32.mrb[2].mxu0 }
  0xed   : > { %v491_v48 = vadd.f32 %v2151_v47, %v2767_v42  ;;  %v482_v49 = vpop.f32.mrb[3].mxu0  ;;  %v736_v51 = vmax.f32 %v488_v44, 0.0 }
  0xee   : > { %v483_v50 = vadd.f32 %v2767_v42, %v482_v49  ;;  %v734_v53 = vmax.f32 %v480_v46, 0.0 }
  0xef   : > { %v737_v52 = vmax.f32 %v491_v48, 0.0 }
  0xf0   : > { %v735_v54 = vmax.f32 %v483_v50, 0.0 }
  0xf1   : > { %v799_v55 = vpack.c.bf16 %v737_v52, %v736_v51 }
  0xf2   : > { %v798_v56 = vpack.c.bf16 %v735_v54, %v734_v53  ;;  %v2154_v57 = vpop.f32.mrb[4].mxu0 }
  0xf3   : > { %v504_v58 = vadd.f32 %v2154_v57, %v2767_v42  ;;  %v495_v59 = vpop.f32.mrb[5].mxu0 }
  0xf4   : > { %v496_v60 = vadd.f32 %v2767_v42, %v495_v59  ;;  %v2155_v61 = vpop.f32.mrb[6].mxu0  ;;  %2228 = vmatprep.mubr.bf16.mxu0 %v798_v56 }
  0xf5   : > { %v507_v62 = vadd.f32 %v2155_v61, %v2767_v42  ;;  %v498_v63 = vpop.f32.mrb[7].mxu0  ;;  %2229 = vmatmul.mubr.bf16.vlgmr.msra.gmra.mrb[64].mxu0 %v799_v55  ;;  %v740_v1 = vmax.f32 %v504_v58, 0.0 }
  0xf6   : > { %v499_v0 = vadd.f32 %v2767_v42, %v498_v63  ;;  %v738_v3 = vmax.f32 %v496_v60, 0.0 }
  0xf7   : > { %v741_v2 = vmax.f32 %v507_v62, 0.0 }
  0xf8   : > { %v739_v4 = vmax.f32 %v499_v0, 0.0 }
  0xf9   : > { %v801_v5 = vpack.c.bf16 %v741_v2, %v740_v1 }
  0xfa   : > { %v2158_v6 = vpop.f32.mrb[8].mxu0  ;;  %v800_v7 = vpack.c.bf16 %v739_v4, %v738_v3 }
  0xfb   : > { %v520_v8 = vadd.f32 %v2158_v6, %v2767_v42  ;;  %v511_v9 = vpop.f32.mrb[9].mxu0 }
  0xfc   : > { %v512_v10 = vadd.f32 %v2767_v42, %v511_v9  ;;  %v2159_v11 = vpop.f32.mrb[10].mxu0  ;;  %2232 = vmatprep.mubr.bf16.mxu1 %v800_v7 }
  0xfd   : > { %v523_v12 = vadd.f32 %v2159_v11, %v2767_v42  ;;  %v514_v13 = vpop.f32.mrb[11].mxu0  ;;  %2233 = vmatmul.mubr.bf16.vlgmr.msra.gmra.mrb[0].mxu1 %v801_v5  ;;  %v744_v15 = vmax.f32 %v520_v8, 0.0 }
  0xfe   : > { %v515_v14 = vadd.f32 %v2767_v42, %v514_v13  ;;  %v742_v17 = vmax.f32 %v512_v10, 0.0 }
  0xff   : > { %v745_v16 = vmax.f32 %v523_v12, 0.0 }
 0x100   : > { %v743_v18 = vmax.f32 %v515_v14, 0.0 }
 0x101   : > { %v803_v19 = vpack.c.bf16 %v745_v16, %v744_v15 }
 0x102   : > { %v802_v20 = vpack.c.bf16 %v743_v18, %v742_v17  ;;  %v2162_v21 = vpop.f32.mrb[12].mxu0 }
 0x103   : > { %v536_v22 = vadd.f32 %v2162_v21, %v2767_v42  ;;  %v527_v23 = vpop.f32.mrb[13].mxu0 }
 0x104   : > { %v528_v24 = vadd.f32 %v2767_v42, %v527_v23  ;;  %v2163_v25 = vpop.f32.mrb[14].mxu0  ;;  %2236 = vmatprep.mubr.bf16.mxu1 %v802_v20 }
 0x105   : > { %v539_v26 = vadd.f32 %v2163_v25, %v2767_v42  ;;  %v530_v27 = vpop.f32.mrb[15].mxu0  ;;  %2237 = vmatmul.mubr.bf16.gmra.mrb[4].mxu1 %v803_v19  ;;  %v748_v29 = vmax.f32 %v536_v22, 0.0 }
 0x106   : > { %v531_v28 = vadd.f32 %v2767_v42, %v530_v27  ;;  %v746_v31 = vmax.f32 %v528_v24, 0.0 }
 0x107   : > { %v749_v30 = vmax.f32 %v539_v26, 0.0 }
 0x108   : > { %v747_v32 = vmax.f32 %v531_v28, 0.0 }
 0x109   : > { %v805_v33 = vpack.c.bf16 %v749_v30, %v748_v29 }
 0x10a   : > { %v804_v34 = vpack.c.bf16 %v747_v32, %v746_v31  ;;  %v2166_v35 = vpop.f32.mrb[16].mxu0 }
 0x10b   : > { %v552_v36 = vadd.f32 %v2166_v35, %v2767_v42  ;;  %v543_v37 = vpop.f32.mrb[17].mxu0 }
 0x10c   : > { %v544_v38 = vadd.f32 %v2767_v42, %v543_v37  ;;  %v2167_v39 = vpop.f32.mrb[18].mxu0  ;;  %2240 = vmatprep.mubr.bf16.mxu1 %v804_v34 }
 0x10d   : > { %v555_v40 = vadd.f32 %v2167_v39, %v2767_v42  ;;  %v546_v41 = vpop.f32.mrb[19].mxu0  ;;  %2241 = vmatmul.mubr.bf16.gmra.mrb[8].mxu1 %v805_v33  ;;  %v752_v44 = vmax.f32 %v552_v36, 0.0 }
 0x10e   : > { %v547_v43 = vadd.f32 %v2767_v42, %v546_v41  ;;  %v750_v46 = vmax.f32 %v544_v38, 0.0 }
 0x10f   : > { %v753_v45 = vmax.f32 %v555_v40, 0.0 }
 0x110   : > { %v751_v47 = vmax.f32 %v547_v43, 0.0 }
 0x111   : > { %v807_v48 = vpack.c.bf16 %v753_v45, %v752_v44 }
 0x112   : > { %v806_v49 = vpack.c.bf16 %v751_v47, %v750_v46  ;;  %v2170_v50 = vpop.f32.mrb[20].mxu0 }
 0x113   : > { %v568_v51 = vadd.f32 %v2170_v50, %v2767_v42  ;;  %v559_v52 = vpop.f32.mrb[21].mxu0 }
 0x114   : > { %v560_v53 = vadd.f32 %v2767_v42, %v559_v52  ;;  %v2171_v54 = vpop.f32.mrb[22].mxu0  ;;  %2244 = vmatprep.mubr.bf16.mxu1 %v806_v49 }
 0x115   : > { %v571_v55 = vadd.f32 %v2171_v54, %v2767_v42  ;;  %v562_v56 = vpop.f32.mrb[23].mxu0  ;;  %2245 = vmatmul.mubr.bf16.gmra.mrb[12].mxu1 %v807_v48  ;;  %v756_v58 = vmax.f32 %v568_v51, 0.0 }
 0x116   : > { %v563_v57 = vadd.f32 %v2767_v42, %v562_v56  ;;  %v754_v60 = vmax.f32 %v560_v53, 0.0 }
 0x117   : > { %v757_v59 = vmax.f32 %v571_v55, 0.0 }
 0x118   : > { %v755_v61 = vmax.f32 %v563_v57, 0.0 }
 0x119   : > { %v809_v62 = vpack.c.bf16 %v757_v59, %v756_v58 }
 0x11a   : > { %v808_v63 = vpack.c.bf16 %v755_v61, %v754_v60  ;;  %v2174_v0 = vpop.f32.mrb[24].mxu0 }
 0x11b   : > { %v584_v1 = vadd.f32 %v2174_v0, %v2767_v42  ;;  %v575_v2 = vpop.f32.mrb[25].mxu0 }
 0x11c   : > { %v576_v3 = vadd.f32 %v2767_v42, %v575_v2  ;;  %v2175_v4 = vpop.f32.mrb[26].mxu0  ;;  %2248 = vmatprep.mubr.bf16.mxu1 %v808_v63 }
 0x11d   : > { %v587_v5 = vadd.f32 %v2175_v4, %v2767_v42  ;;  %v578_v6 = vpop.f32.mrb[27].mxu0  ;;  %2249 = vmatmul.mubr.bf16.gmra.mrb[16].mxu1 %v809_v62  ;;  %v760_v8 = vmax.f32 %v584_v1, 0.0 }
 0x11e   : > { %v579_v7 = vadd.f32 %v2767_v42, %v578_v6  ;;  %v758_v10 = vmax.f32 %v576_v3, 0.0 }
 0x11f   : > { %v761_v9 = vmax.f32 %v587_v5, 0.0 }
 0x120   : > { %v759_v11 = vmax.f32 %v579_v7, 0.0 }
 0x121   : > { %v811_v12 = vpack.c.bf16 %v761_v9, %v760_v8 }
 0x122   : > { %v810_v13 = vpack.c.bf16 %v759_v11, %v758_v10  ;;  %v2178_v14 = vpop.f32.mrb[28].mxu0 }
 0x123   : > { %v600_v15 = vadd.f32 %v2178_v14, %v2767_v42  ;;  %v591_v16 = vpop.f32.mrb[29].mxu0 }
 0x124   : > { %v592_v17 = vadd.f32 %v2767_v42, %v591_v16  ;;  %v2179_v18 = vpop.f32.mrb[30].mxu0  ;;  %2252 = vmatprep.mubr.bf16.mxu1 %v810_v13 }
 0x125   : > { %v603_v19 = vadd.f32 %v2179_v18, %v2767_v42  ;;  %v594_v20 = vpop.f32.mrb[31].mxu0  ;;  %2253 = vmatmul.mubr.bf16.gmra.mrb[20].mxu1 %v811_v12  ;;  %v764_v22 = vmax.f32 %v600_v15, 0.0 }
 0x126   : > { %v595_v21 = vadd.f32 %v2767_v42, %v594_v20  ;;  %v762_v24 = vmax.f32 %v592_v17, 0.0 }
 0x127   : > { %v765_v23 = vmax.f32 %v603_v19, 0.0 }
 0x128   : > { %v763_v25 = vmax.f32 %v595_v21, 0.0 }
 0x129   : > { %v813_v26 = vpack.c.bf16 %v765_v23, %v764_v22 }
 0x12a   : > { %v812_v27 = vpack.c.bf16 %v763_v25, %v762_v24  ;;  %v2182_v28 = vpop.f32.mrb[32].mxu0 }
 0x12b   : > { %v616_v29 = vadd.f32 %v2182_v28, %v2767_v42  ;;  %v607_v30 = vpop.f32.mrb[33].mxu0 }
 0x12c   : > { %v608_v31 = vadd.f32 %v2767_v42, %v607_v30  ;;  %v2183_v32 = vpop.f32.mrb[34].mxu0  ;;  %2256 = vmatprep.mubr.bf16.mxu1 %v812_v27 }
 0x12d   : > { %v619_v33 = vadd.f32 %v2183_v32, %v2767_v42  ;;  %v610_v34 = vpop.f32.mrb[35].mxu0  ;;  %2257 = vmatmul.mubr.bf16.gmra.mrb[24].mxu1 %v813_v26  ;;  %v768_v36 = vmax.f32 %v616_v29, 0.0 }
 0x12e   : > { %v611_v35 = vadd.f32 %v2767_v42, %v610_v34  ;;  %v766_v38 = vmax.f32 %v608_v31, 0.0 }
 0x12f   : > { %v769_v37 = vmax.f32 %v619_v33, 0.0 }
 0x130   : > { %v767_v39 = vmax.f32 %v611_v35, 0.0 }
 0x131   : > { %v815_v40 = vpack.c.bf16 %v769_v37, %v768_v36 }
 0x132   : > { %v814_v41 = vpack.c.bf16 %v767_v39, %v766_v38  ;;  %v2186_v43 = vpop.f32.mrb[36].mxu0 }
 0x133   : > { %v632_v44 = vadd.f32 %v2186_v43, %v2767_v42  ;;  %v623_v45 = vpop.f32.mrb[37].mxu0 }
 0x134   : > { %v624_v46 = vadd.f32 %v2767_v42, %v623_v45  ;;  %v2187_v47 = vpop.f32.mrb[38].mxu0  ;;  %2260 = vmatprep.mubr.bf16.mxu1 %v814_v41 }
 0x135   : > { %v635_v48 = vadd.f32 %v2187_v47, %v2767_v42  ;;  %v626_v49 = vpop.f32.mrb[39].mxu0  ;;  %2261 = vmatmul.mubr.bf16.gmra.mrb[28].mxu1 %v815_v40  ;;  %v772_v51 = vmax.f32 %v632_v44, 0.0 }
 0x136   : > { %v627_v50 = vadd.f32 %v2767_v42, %v626_v49  ;;  %v770_v53 = vmax.f32 %v624_v46, 0.0 }
 0x137   : > { %v773_v52 = vmax.f32 %v635_v48, 0.0 }
 0x138   : > { %v771_v54 = vmax.f32 %v627_v50, 0.0 }
 0x139   : > { %v817_v55 = vpack.c.bf16 %v773_v52, %v772_v51 }
 0x13a   : > { %v816_v56 = vpack.c.bf16 %v771_v54, %v770_v53  ;;  %v2190_v57 = vpop.f32.mrb[40].mxu0 }
 0x13b   : > { %v648_v58 = vadd.f32 %v2190_v57, %v2767_v42  ;;  %v639_v59 = vpop.f32.mrb[41].mxu0 }
 0x13c   : > { %v640_v60 = vadd.f32 %v2767_v42, %v639_v59  ;;  %v2191_v61 = vpop.f32.mrb[42].mxu0  ;;  %2264 = vmatprep.mubr.bf16.mxu1 %v816_v56 }
 0x13d   : > { %v651_v62 = vadd.f32 %v2191_v61, %v2767_v42  ;;  %v642_v63 = vpop.f32.mrb[43].mxu0  ;;  %2265 = vmatmul.mubr.bf16.gmra.mrb[32].mxu1 %v817_v55  ;;  %v776_v1 = vmax.f32 %v648_v58, 0.0 }
 0x13e   : > { %v643_v0 = vadd.f32 %v2767_v42, %v642_v63  ;;  %v774_v3 = vmax.f32 %v640_v60, 0.0 }
 0x13f   : > { %v777_v2 = vmax.f32 %v651_v62, 0.0 }
 0x140   : > { %v775_v4 = vmax.f32 %v643_v0, 0.0 }
 0x141   : > { %v819_v5 = vpack.c.bf16 %v777_v2, %v776_v1 }
 0x142   : > { %v818_v6 = vpack.c.bf16 %v775_v4, %v774_v3  ;;  %v2194_v7 = vpop.f32.mrb[44].mxu0 }
 0x143   : > { %v664_v8 = vadd.f32 %v2194_v7, %v2767_v42  ;;  %v655_v9 = vpop.f32.mrb[45].mxu0 }
 0x144   : > { %v656_v10 = vadd.f32 %v2767_v42, %v655_v9  ;;  %v2195_v11 = vpop.f32.mrb[46].mxu0  ;;  %2268 = vmatprep.mubr.bf16.mxu1 %v818_v6 }
 0x145   : > { %v667_v12 = vadd.f32 %v2195_v11, %v2767_v42  ;;  %v658_v13 = vpop.f32.mrb[47].mxu0  ;;  %2269 = vmatmul.mubr.bf16.gmra.mrb[36].mxu1 %v819_v5  ;;  %v780_v15 = vmax.f32 %v664_v8, 0.0 }
 0x146   : > { %v659_v14 = vadd.f32 %v2767_v42, %v658_v13  ;;  %v778_v17 = vmax.f32 %v656_v10, 0.0 }
 0x147   : > { %v781_v16 = vmax.f32 %v667_v12, 0.0 }
 0x148   : > { %v779_v18 = vmax.f32 %v659_v14, 0.0  ;;  %v2836_v14 = vld [vmem:[%s3684_s4] ss:$0 sm:$0xff] }
 0x149   : > { %v821_v19 = vpack.c.bf16 %v781_v16, %v780_v15 }
 0x14a   : > { %v820_v20 = vpack.c.bf16 %v779_v18, %v778_v17  ;;  %v2198_v21 = vpop.f32.mrb[48].mxu0 }
 0x14b   : > { %v680_v22 = vadd.f32 %v2198_v21, %v2767_v42  ;;  %v671_v23 = vpop.f32.mrb[49].mxu0 }
 0x14c   : > { %v672_v24 = vadd.f32 %v2767_v42, %v671_v23  ;;  %v2199_v25 = vpop.f32.mrb[50].mxu0  ;;  %2272 = vmatprep.mubr.bf16.mxu1 %v820_v20 }
 0x14d   : > { %v683_v26 = vadd.f32 %v2199_v25, %v2767_v42  ;;  %v674_v27 = vpop.f32.mrb[51].mxu0  ;;  %2273 = vmatmul.mubr.bf16.gmra.mrb[40].mxu1 %v821_v19  ;;  %v784_v29 = vmax.f32 %v680_v22, 0.0 }
 0x14e   : > { %v675_v28 = vadd.f32 %v2767_v42, %v674_v27  ;;  %v782_v31 = vmax.f32 %v672_v24, 0.0 }
 0x14f   : > { %v785_v30 = vmax.f32 %v683_v26, 0.0 }
 0x150   : > { %v783_v32 = vmax.f32 %v675_v28, 0.0 }
 0x151   : > { %v823_v33 = vpack.c.bf16 %v785_v30, %v784_v29 }
 0x152   : > { %v822_v34 = vpack.c.bf16 %v783_v32, %v782_v31  ;;  %v2202_v35 = vpop.f32.mrb[52].mxu0 }
 0x153   : > { %v696_v36 = vadd.f32 %v2202_v35, %v2767_v42  ;;  %v687_v37 = vpop.f32.mrb[53].mxu0 }
 0x154   : > { %v688_v38 = vadd.f32 %v2767_v42, %v687_v37  ;;  %v2203_v39 = vpop.f32.mrb[54].mxu0  ;;  %2276 = vmatprep.mubr.bf16.mxu1 %v822_v34 }
 0x155   : > { %v699_v40 = vadd.f32 %v2203_v39, %v2767_v42  ;;  %v690_v41 = vpop.f32.mrb[55].mxu0  ;;  %2277 = vmatmul.mubr.bf16.gmra.mrb[44].mxu1 %v823_v33  ;;  %v788_v44 = vmax.f32 %v696_v36, 0.0 }
 0x156   : > { %v691_v43 = vadd.f32 %v2767_v42, %v690_v41  ;;  %v786_v46 = vmax.f32 %v688_v38, 0.0 }
 0x157   : > { %v789_v45 = vmax.f32 %v699_v40, 0.0 }
 0x158   : > { %v787_v47 = vmax.f32 %v691_v43, 0.0 }
 0x159   : > { %v825_v48 = vpack.c.bf16 %v789_v45, %v788_v44 }
 0x15a   : > { %v824_v49 = vpack.c.bf16 %v787_v47, %v786_v46  ;;  %v2206_v50 = vpop.f32.mrb[56].mxu0 }
 0x15b   : > { %v712_v51 = vadd.f32 %v2206_v50, %v2767_v42  ;;  %v703_v52 = vpop.f32.mrb[57].mxu0 }
 0x15c   : > { %v704_v53 = vadd.f32 %v2767_v42, %v703_v52  ;;  %v2207_v54 = vpop.f32.mrb[58].mxu0  ;;  %2280 = vmatprep.mubr.bf16.mxu1 %v824_v49 }
 0x15d   : > { %v715_v55 = vadd.f32 %v2207_v54, %v2767_v42  ;;  %v706_v56 = vpop.f32.mrb[59].mxu0  ;;  %2281 = vmatmul.mubr.bf16.gmra.mrb[48].mxu1 %v825_v48  ;;  %v792_v58 = vmax.f32 %v712_v51, 0.0 }
 0x15e   : > { %v707_v57 = vadd.f32 %v2767_v42, %v706_v56  ;;  %v790_v60 = vmax.f32 %v704_v53, 0.0 }
 0x15f   : > { %v793_v59 = vmax.f32 %v715_v55, 0.0 }
 0x160   : > { %v791_v61 = vmax.f32 %v707_v57, 0.0 }
 0x161   : > { %v827_v62 = vpack.c.bf16 %v793_v59, %v792_v58 }
 0x162   : > { %v826_v63 = vpack.c.bf16 %v791_v61, %v790_v60  ;;  %v2210_v0 = vpop.f32.mrb[60].mxu0 }
 0x163   : > { %v728_v1 = vadd.f32 %v2210_v0, %v2767_v42  ;;  %v719_v2 = vpop.f32.mrb[61].mxu0 }
 0x164   : > { %v720_v3 = vadd.f32 %v2767_v42, %v719_v2  ;;  %v2211_v4 = vpop.f32.mrb[62].mxu0  ;;  %2284 = vmatprep.mubr.bf16.mxu1 %v826_v63 }
 0x165   : > { %v731_v5 = vadd.f32 %v2211_v4, %v2767_v42  ;;  %v722_v6 = vpop.f32.mrb[63].mxu0  ;;  %2285 = vmatmul.mubr.bf16.gmra.mrb[52].mxu1 %v827_v62  ;;  %v796_v8 = vmax.f32 %v728_v1, 0.0 }
 0x166   : > { %v723_v7 = vadd.f32 %v2767_v42, %v722_v6  ;;  %v794_v10 = vmax.f32 %v720_v3, 0.0 }
 0x167   : > { %v797_v9 = vmax.f32 %v731_v5, 0.0 }
 0x168   : > { %v795_v11 = vmax.f32 %v723_v7, 0.0 }
 0x169   : > { %v829_v12 = vpack.c.bf16 %v797_v9, %v796_v8 }
 0x16a   : > { %v828_v13 = vpack.c.bf16 %v795_v11, %v794_v10 }
 0x16c   : > { %2288 = vmatprep.mubr.bf16.mxu1 %v828_v13 }
 0x16d   : > { %2289 = vmatmul.mubr.bf16.gmra.mrb[56].mxu1 %v829_v12 }
 0x1c8   : > { %v2230_v15 = vpop.f32.mrb[64].mxu0 }
 0x1c9   : > { %v2839_v16 = vadd.f32 %v2230_v15, %v2836_v14  ;;  %v935_v17 = vpop.f32.mrb[65].mxu0 }
 0x1ca   : > { %v2842_v42 = vadd.f32 %v2836_v14, %v935_v17  ;;  %v2231_v18 = vpop.f32.mrb[66].mxu0 }
 0x1cb   : > { %v2845_v19 = vadd.f32 %v2231_v18, %v2836_v14  ;;  %v938_v20 = vpop.f32.mrb[67].mxu0  ;;  %v1197_v21 = vsel %vm1190_vm1, %v2839_v16, -inf }
 0x1cc   : > { %v2850_v22 = vadd.f32 %v2836_v14, %v938_v20  ;;  %1198 = vmax.xlane.f32.xlu1 %v1197_v21  ;;  %v1191_v23 = vsel %vm1190_vm1, %v2842_v42, -inf }
 0x1cd   : > { %1192 = vmax.xlane.f32.xlu0 %v1191_v23  ;;  %v1200_v24 = vsel %vm1190_vm1, %v2845_v19, -inf }
 0x1ce   : > { %v1194_v26 = vsel %vm1190_vm1, %v2850_v22, -inf }
 0x1d0   : > { %v2234_v25 = vpop.f32.mrb[0].mxu1  ;;  %1201 = vmax.xlane.f32.xlu1 %v1200_v24 }
 0x1d1   : > { %v2859_v27 = vadd.f32 %v2234_v25, %v2836_v14  ;;  %v951_v28 = vpop.f32.mrb[1].mxu1  ;;  %1195 = vmax.xlane.f32.xlu0 %v1194_v26 }
 0x1d2   : > { %v2235_v29 = vpop.f32.mrb[2].mxu1  ;;  %v2867_v33 = vadd.f32 %v2836_v14, %v951_v28 }
 0x1d3   : > { %v2862_v30 = vadd.f32 %v2235_v29, %v2836_v14  ;;  %v954_v31 = vpop.f32.mrb[3].mxu1  ;;  %v1209_v32 = vsel %vm1190_vm1, %v2859_v27, -inf }
 0x1d4   : > { %v2870_v34 = vadd.f32 %v2836_v14, %v954_v31  ;;  %v1203_v37 = vsel %vm1190_vm1, %v2867_v33, -inf }
 0x1d5   : > { %1210 = vmax.xlane.f32.xlu0 %v1209_v32  ;;  %v1212_v35 = vsel %vm1190_vm1, %v2862_v30, -inf }
 0x1d6   : > { %1213 = vmax.xlane.f32.xlu1 %v1212_v35  ;;  %v1206_v40 = vsel %vm1190_vm1, %v2870_v34, -inf }
 0x1d8   : > { %v2238_v36 = vpop.f32.mrb[4].mxu1 }
 0x1d9   : > { %v2877_v38 = vadd.f32 %v2238_v36, %v2836_v14  ;;  %v967_v39 = vpop.f32.mrb[5].mxu1  ;;  %1204 = vmax.xlane.f32.xlu0 %v1203_v37 }
 0x1da   : > { %v2239_v41 = vpop.f32.mrb[6].mxu1  ;;  %1207 = vmax.xlane.f32.xlu1 %v1206_v40  ;;  %v2887_v46 = vadd.f32 %v2836_v14, %v967_v39 }
 0x1db   : > { %v2882_v43 = vadd.f32 %v2239_v41, %v2836_v14  ;;  %v970_v44 = vpop.f32.mrb[7].mxu1  ;;  %v1221_v45 = vsel %vm1190_vm1, %v2877_v38, -inf }
 0x1dc   : > { %v2890_v47 = vadd.f32 %v2836_v14, %v970_v44  ;;  %v1215_v50 = vsel %vm1190_vm1, %v2887_v46, -inf }
 0x1dd   : > { %1222 = vmax.xlane.f32.xlu0 %v1221_v45  ;;  %v1224_v48 = vsel %vm1190_vm1, %v2882_v43, -inf }
 0x1de   : > { %1225 = vmax.xlane.f32.xlu1 %v1224_v48  ;;  %v1218_v53 = vsel %vm1190_vm1, %v2890_v47, -inf }
 0x1e0   : > { %v2242_v49 = vpop.f32.mrb[8].mxu1 }
 0x1e1   : > { %v2897_v51 = vadd.f32 %v2242_v49, %v2836_v14  ;;  %v983_v52 = vpop.f32.mrb[9].mxu1  ;;  %1216 = vmax.xlane.f32.xlu0 %v1215_v50 }
 0x1e2   : > { %v2243_v54 = vpop.f32.mrb[10].mxu1  ;;  %1219 = vmax.xlane.f32.xlu1 %v1218_v53  ;;  %v2907_v58 = vadd.f32 %v2836_v14, %v983_v52 }
 0x1e3   : > { %v2902_v55 = vadd.f32 %v2243_v54, %v2836_v14  ;;  %v986_v56 = vpop.f32.mrb[11].mxu1  ;;  %v1233_v57 = vsel %vm1190_vm1, %v2897_v51, -inf }
 0x1e4   : > { %v2910_v59 = vadd.f32 %v2836_v14, %v986_v56  ;;  %v1227_v62 = vsel %vm1190_vm1, %v2907_v58, -inf }
 0x1e5   : > { %1234 = vmax.xlane.f32.xlu0 %v1233_v57  ;;  %v1236_v60 = vsel %vm1190_vm1, %v2902_v55, -inf }
 0x1e6   : > { %1237 = vmax.xlane.f32.xlu1 %v1236_v60  ;;  %v1230_v1 = vsel %vm1190_vm1, %v2910_v59, -inf }
 0x1e8   : > { %v2246_v61 = vpop.f32.mrb[12].mxu1 }
 0x1e9   : > { %v2917_v63 = vadd.f32 %v2246_v61, %v2836_v14  ;;  %v999_v0 = vpop.f32.mrb[13].mxu1  ;;  %1228 = vmax.xlane.f32.xlu0 %v1227_v62 }
 0x1ea   : > { %v2247_v2 = vpop.f32.mrb[14].mxu1  ;;  %1231 = vmax.xlane.f32.xlu1 %v1230_v1  ;;  %v2927_v6 = vadd.f32 %v2836_v14, %v999_v0 }
 0x1eb   : > { %v2922_v3 = vadd.f32 %v2247_v2, %v2836_v14  ;;  %v1002_v4 = vpop.f32.mrb[15].mxu1  ;;  %v1245_v5 = vsel %vm1190_vm1, %v2917_v63, -inf }
 0x1ec   : > { %v2930_v7 = vadd.f32 %v2836_v14, %v1002_v4  ;;  %v1239_v10 = vsel %vm1190_vm1, %v2927_v6, -inf }
 0x1ed   : > { %1246 = vmax.xlane.f32.xlu0 %v1245_v5  ;;  %v1248_v8 = vsel %vm1190_vm1, %v2922_v3, -inf }
 0x1ee   : > { %1249 = vmax.xlane.f32.xlu1 %v1248_v8  ;;  %v1242_v13 = vsel %vm1190_vm1, %v2930_v7, -inf }
 0x1f0   : > { %v2250_v9 = vpop.f32.mrb[16].mxu1 }
 0x1f1   : > { %v2937_v11 = vadd.f32 %v2250_v9, %v2836_v14  ;;  %v1015_v12 = vpop.f32.mrb[17].mxu1  ;;  %1240 = vmax.xlane.f32.xlu0 %v1239_v10 }
 0x1f2   : > { %v2251_v15 = vpop.f32.mrb[18].mxu1  ;;  %1243 = vmax.xlane.f32.xlu1 %v1242_v13  ;;  %v2947_v21 = vadd.f32 %v2836_v14, %v1015_v12 }
 0x1f3   : > { %v2942_v17 = vadd.f32 %v2251_v15, %v2836_v14  ;;  %v1018_v18 = vpop.f32.mrb[19].mxu1  ;;  %v1257_v20 = vsel %vm1190_vm1, %v2937_v11, -inf }
 0x1f4   : > { %v2950_v23 = vadd.f32 %v2836_v14, %v1018_v18  ;;  %v1251_v26 = vsel %vm1190_vm1, %v2947_v21, -inf }
 0x1f5   : > { %1258 = vmax.xlane.f32.xlu0 %v1257_v20  ;;  %v1260_v24 = vsel %vm1190_vm1, %v2942_v17, -inf }
 0x1f6   : > { %1261 = vmax.xlane.f32.xlu1 %v1260_v24  ;;  %v1254_v31 = vsel %vm1190_vm1, %v2950_v23, -inf }
 0x1f8   : > { %v2254_v25 = vpop.f32.mrb[20].mxu1 }
 0x1f9   : > { %v2957_v28 = vadd.f32 %v2254_v25, %v2836_v14  ;;  %v1031_v29 = vpop.f32.mrb[21].mxu1  ;;  %1252 = vmax.xlane.f32.xlu0 %v1251_v26 }
 0x1fa   : > { %v2255_v32 = vpop.f32.mrb[22].mxu1  ;;  %1255 = vmax.xlane.f32.xlu1 %v1254_v31  ;;  %v2967_v39 = vadd.f32 %v2836_v14, %v1031_v29 }
 0x1fb   : > { %v2962_v35 = vadd.f32 %v2255_v32, %v2836_v14  ;;  %v1034_v36 = vpop.f32.mrb[23].mxu1  ;;  %v1269_v37 = vsel %vm1190_vm1, %v2957_v28, -inf }
 0x1fc   : > { %v2970_v40 = vadd.f32 %v2836_v14, %v1034_v36  ;;  %v1263_v45 = vsel %vm1190_vm1, %v2967_v39, -inf }
 0x1fd   : > { %1270 = vmax.xlane.f32.xlu0 %v1269_v37  ;;  %v1272_v41 = vsel %vm1190_vm1, %v2962_v35, -inf }
 0x1fe   : > { %1273 = vmax.xlane.f32.xlu1 %v1272_v41  ;;  %v1266_v50 = vsel %vm1190_vm1, %v2970_v40, -inf }
 0x200   : > { %v2258_v44 = vpop.f32.mrb[24].mxu1 }
 0x201   : > { %v2977_v48 = vadd.f32 %v2258_v44, %v2836_v14  ;;  %v1047_v49 = vpop.f32.mrb[25].mxu1  ;;  %1264 = vmax.xlane.f32.xlu0 %v1263_v45 }
 0x202   : > { %v2259_v52 = vpop.f32.mrb[26].mxu1  ;;  %1267 = vmax.xlane.f32.xlu1 %v1266_v50  ;;  %v2987_v57 = vadd.f32 %v2836_v14, %v1047_v49 }
 0x203   : > { %v2982_v53 = vadd.f32 %v2259_v52, %v2836_v14  ;;  %v1050_v54 = vpop.f32.mrb[27].mxu1  ;;  %v1281_v56 = vsel %vm1190_vm1, %v2977_v48, -inf }
 0x204   : > { %v2990_v60 = vadd.f32 %v2836_v14, %v1050_v54  ;;  %v1275_v0 = vsel %vm1190_vm1, %v2987_v57, -inf }
 0x205   : > { %1282 = vmax.xlane.f32.xlu0 %v1281_v56  ;;  %v1284_v61 = vsel %vm1190_vm1, %v2982_v53, -inf }
 0x206   : > { %1285 = vmax.xlane.f32.xlu1 %v1284_v61  ;;  %v1278_v4 = vsel %vm1190_vm1, %v2990_v60, -inf }
 0x208   : > { %v2262_v62 = vpop.f32.mrb[28].mxu1 }
 0x209   : > { %v2997_v1 = vadd.f32 %v2262_v62, %v2836_v14  ;;  %v1063_v2 = vpop.f32.mrb[29].mxu1  ;;  %1276 = vmax.xlane.f32.xlu0 %v1275_v0 }
 0x20a   : > { %v2263_v5 = vpop.f32.mrb[30].mxu1  ;;  %1279 = vmax.xlane.f32.xlu1 %v1278_v4  ;;  %v3007_v12 = vadd.f32 %v2836_v14, %v1063_v2 }
 0x20b   : > { %v3002_v8 = vadd.f32 %v2263_v5, %v2836_v14  ;;  %v1066_v9 = vpop.f32.mrb[31].mxu1  ;;  %v1293_v10 = vsel %vm1190_vm1, %v2997_v1, -inf }
 0x20c   : > { %v3010_v13 = vadd.f32 %v2836_v14, %v1066_v9  ;;  %v1287_v20 = vsel %vm1190_vm1, %v3007_v12, -inf }
 0x20d   : > { %1294 = vmax.xlane.f32.xlu0 %v1293_v10  ;;  %v1296_v15 = vsel %vm1190_vm1, %v3002_v8, -inf }
 0x20e   : > { %1297 = vmax.xlane.f32.xlu1 %v1296_v15  ;;  %v1290_v26 = vsel %vm1190_vm1, %v3010_v13, -inf }
 0x210   : > { %v2266_v18 = vpop.f32.mrb[32].mxu1 }
 0x211   : > { %v3017_v24 = vadd.f32 %v2266_v18, %v2836_v14  ;;  %v1079_v25 = vpop.f32.mrb[33].mxu1  ;;  %1288 = vmax.xlane.f32.xlu0 %v1287_v20 }
 0x212   : > { %v2267_v29 = vpop.f32.mrb[34].mxu1  ;;  %1291 = vmax.xlane.f32.xlu1 %v1290_v26  ;;  %v3027_v37 = vadd.f32 %v2836_v14, %v1079_v25 }
 0x213   : > { %v3022_v31 = vadd.f32 %v2267_v29, %v2836_v14  ;;  %v1082_v32 = vpop.f32.mrb[35].mxu1  ;;  %v1305_v36 = vsel %vm1190_vm1, %v3017_v24, -inf }
 0x214   : > { %v3030_v41 = vadd.f32 %v2836_v14, %v1082_v32  ;;  %v1299_v49 = vsel %vm1190_vm1, %v3027_v37, -inf }
 0x215   : > { %1306 = vmax.xlane.f32.xlu0 %v1305_v36  ;;  %v1308_v44 = vsel %vm1190_vm1, %v3022_v31, -inf }
 0x216   : > { %1309 = vmax.xlane.f32.xlu1 %v1308_v44  ;;  %v1302_v54 = vsel %vm1190_vm1, %v3030_v41, -inf }
 0x218   : > { %v2270_v45 = vpop.f32.mrb[36].mxu1 }
 0x219   : > { %v3037_v50 = vadd.f32 %v2270_v45, %v2836_v14  ;;  %v1095_v52 = vpop.f32.mrb[37].mxu1  ;;  %1300 = vmax.xlane.f32.xlu0 %v1299_v49 }
 0x21a   : > { %v2271_v56 = vpop.f32.mrb[38].mxu1  ;;  %1303 = vmax.xlane.f32.xlu1 %v1302_v54  ;;  %v3047_v2 = vadd.f32 %v2836_v14, %v1095_v52 }
 0x21b   : > { %v3042_v61 = vadd.f32 %v2271_v56, %v2836_v14  ;;  %v1098_v62 = vpop.f32.mrb[39].mxu1  ;;  %v1317_v0 = vsel %vm1190_vm1, %v3037_v50, -inf }
 0x21c   : > { %v3050_v4 = vadd.f32 %v2836_v14, %v1098_v62  ;;  %v1311_v10 = vsel %vm1190_vm1, %v3047_v2, -inf }
 0x21d   : > { %1318 = vmax.xlane.f32.xlu0 %v1317_v0  ;;  %v1320_v5 = vsel %vm1190_vm1, %v3042_v61, -inf }
 0x21e   : > { %1321 = vmax.xlane.f32.xlu1 %v1320_v5  ;;  %v1314_v20 = vsel %vm1190_vm1, %v3050_v4, -inf }
 0x220   : > { %v2274_v9 = vpop.f32.mrb[40].mxu1 }
 0x221   : > { %v3057_v15 = vadd.f32 %v2274_v9, %v2836_v14  ;;  %v1111_v18 = vpop.f32.mrb[41].mxu1  ;;  %1312 = vmax.xlane.f32.xlu0 %v1311_v10 }
 0x222   : > { %v2275_v25 = vpop.f32.mrb[42].mxu1  ;;  %1315 = vmax.xlane.f32.xlu1 %v1314_v20  ;;  %v3067_v36 = vadd.f32 %v2836_v14, %v1111_v18 }
 0x223   : > { %v3062_v26 = vadd.f32 %v2275_v25, %v2836_v14  ;;  %v1114_v29 = vpop.f32.mrb[43].mxu1  ;;  %v1329_v32 = vsel %vm1190_vm1, %v3057_v15, -inf }
 0x224   : > { %v3070_v44 = vadd.f32 %v2836_v14, %v1114_v29  ;;  %v1323_v52 = vsel %vm1190_vm1, %v3067_v36, -inf }
 0x225   : > { %1330 = vmax.xlane.f32.xlu0 %v1329_v32  ;;  %v1332_v45 = vsel %vm1190_vm1, %v3062_v26, -inf }
 0x226   : > { %1333 = vmax.xlane.f32.xlu1 %v1332_v45  ;;  %v1326_v62 = vsel %vm1190_vm1, %v3070_v44, -inf }
 0x228   : > { %v2278_v49 = vpop.f32.mrb[44].mxu1 }
 0x229   : > { %v3077_v54 = vadd.f32 %v2278_v49, %v2836_v14  ;;  %v1127_v56 = vpop.f32.mrb[45].mxu1  ;;  %1324 = vmax.xlane.f32.xlu0 %v1323_v52 }
 0x22a   : > { %v2279_v0 = vpop.f32.mrb[46].mxu1  ;;  %1327 = vmax.xlane.f32.xlu1 %v1326_v62  ;;  %v3087_v18 = vadd.f32 %v2836_v14, %v1127_v56 }
 0x22b   : > { %v3082_v5 = vadd.f32 %v2279_v0, %v2836_v14  ;;  %v1130_v9 = vpop.f32.mrb[47].mxu1  ;;  %v1341_v10 = vsel %vm1190_vm1, %v3077_v54, -inf }
 0x22c   : > { %3710 = vst [vmem:[#allocation2_spill] sm:$0xff] %v3087_v18  ;;  %v3090_v20 = vadd.f32 %v2836_v14, %v1130_v9  ;;  %v1335_v32 = vsel %vm1190_vm1, %v3087_v18, -inf }
 0x22d   : > { %1342 = vmax.xlane.f32.xlu0 %v1341_v10  ;;  %v1344_v25 = vsel %vm1190_vm1, %v3082_v5, -inf }
 0x22e   : > { %3711 = vst [vmem:[#allocation3_spill] sm:$0xff] %v3090_v20  ;;  %1345 = vmax.xlane.f32.xlu1 %v1344_v25  ;;  %v1338_v52 = vsel %vm1190_vm1, %v3090_v20, -inf }
 0x230   : > { %v2282_v29 = vpop.f32.mrb[48].mxu1 }
 0x231   : > { %v3097_v45 = vadd.f32 %v2282_v29, %v2836_v14  ;;  %v1143_v49 = vpop.f32.mrb[49].mxu1  ;;  %1336 = vmax.xlane.f32.xlu0 %v1335_v32 }
 0x232   : > { %v2283_v56 = vpop.f32.mrb[50].mxu1  ;;  %1339 = vmax.xlane.f32.xlu1 %v1338_v52  ;;  %v3107_v10 = vadd.f32 %v2836_v14, %v1143_v49 }
 0x233   : > { %3712 = vst [vmem:[#allocation4_spill] sm:$0xff] %v3097_v45  ;;  %v3102_v62 = vadd.f32 %v2283_v56, %v2836_v14  ;;  %v1146_v0 = vpop.f32.mrb[51].mxu1  ;;  %v1353_v9 = vsel %vm1190_vm1, %v3097_v45, -inf }
 0x234   : > { %3714 = vst [vmem:[#allocation6_spill] sm:$0xff] %v3107_v10  ;;  %v3110_v25 = vadd.f32 %v2836_v14, %v1146_v0  ;;  %v1347_v52 = vsel %vm1190_vm1, %v3107_v10, -inf }
 0x235   : > { %3713 = vst [vmem:[#allocation5_spill] sm:$0xff] %v3102_v62  ;;  %1354 = vmax.xlane.f32.xlu0 %v1353_v9  ;;  %v1356_v29 = vsel %vm1190_vm1, %v3102_v62, -inf }
 0x236   : > { %3715 = vst [vmem:[#allocation7_spill] sm:$0xff] %v3110_v25  ;;  %1357 = vmax.xlane.f32.xlu1 %v1356_v29  ;;  %v1350_v49 = vsel %vm1190_vm1, %v3110_v25, -inf }
 0x238   : > { %v2286_v32 = vpop.f32.mrb[52].mxu1 }
 0x239   : > { %v3117_v56 = vadd.f32 %v2286_v32, %v2836_v14  ;;  %v1159_v20 = vpop.f32.mrb[53].mxu1  ;;  %1348 = vmax.xlane.f32.xlu0 %v1347_v52 }
 0x23a   : > { %v2287_v45 = vpop.f32.mrb[54].mxu1  ;;  %1351 = vmax.xlane.f32.xlu1 %v1350_v49  ;;  %v3127_v62 = vadd.f32 %v2836_v14, %v1159_v20 }
 0x23b   : > { %3716 = vst [vmem:[#allocation8_spill] sm:$0xff] %v3117_v56  ;;  %v3122_v0 = vadd.f32 %v2287_v45, %v2836_v14  ;;  %v1162_v9 = vpop.f32.mrb[55].mxu1  ;;  %v1365_v29 = vsel %vm1190_vm1, %v3117_v56, -inf }
 0x23c   : > { %3718 = vst [vmem:[#allocation10_spill] sm:$0xff] %v3127_v62  ;;  %v3130_v32 = vadd.f32 %v2836_v14, %v1162_v9  ;;  %v1359_v45 = vsel %vm1190_vm1, %v3127_v62, -inf }
 0x23d   : > { %3717 = vst [vmem:[#allocation9_spill] sm:$0xff] %v3122_v0  ;;  %1366 = vmax.xlane.f32.xlu0 %v1365_v29  ;;  %v1368_v52 = vsel %vm1190_vm1, %v3122_v0, -inf }
 0x23e   : > { %3719 = vst [vmem:[#allocation11_spill] sm:$0xff] %v3130_v32  ;;  %1369 = vmax.xlane.f32.xlu1 %v1368_v52  ;;  %v1362_v20 = vsel %vm1190_vm1, %v3130_v32, -inf }
 0x240   : > { %v2290_v25 = vpop.f32.mrb[56].mxu1 }
 0x241   : > { %v3137_v49 = vadd.f32 %v2290_v25, %v2836_v14  ;;  %v1175_v10 = vpop.f32.mrb[57].mxu1  ;;  %1360 = vmax.xlane.f32.xlu0 %v1359_v45 }
 0x242   : > { %v2291_v56 = vpop.f32.mrb[58].mxu1  ;;  %1363 = vmax.xlane.f32.xlu1 %v1362_v20  ;;  %v3147_v0 = vadd.f32 %v2836_v14, %v1175_v10 }
 0x243   : > { %3720 = vst [vmem:[#allocation12_spill] sm:$0xff] %v3137_v49  ;;  %v3142_v9 = vadd.f32 %v2291_v56, %v2836_v14  ;;  %v1178_v29 = vpop.f32.mrb[59].mxu1  ;;  %v1377_v52 = vsel %vm1190_vm1, %v3137_v49, -inf }
 0x244   : > { %3722 = vst [vmem:[#allocation14_spill] sm:$0xff] %v3147_v0  ;;  %v3150_v25 = vadd.f32 %v2836_v14, %v1178_v29  ;;  %v1371_v20 = vsel %vm1190_vm1, %v3147_v0, -inf }
 0x245   : > { %3721 = vst [vmem:[#allocation13_spill] sm:$0xff] %v3142_v9  ;;  %1378 = vmax.xlane.f32.xlu0 %v1377_v52  ;;  %v1380_v45 = vsel %vm1190_vm1, %v3142_v9, -inf }
 0x246   : > { %3723 = vst [vmem:[#allocation15_spill] sm:$0xff] %v3150_v25  ;;  %1381 = vmax.xlane.f32.xlu1 %v1380_v45  ;;  %v1374_v56 = vsel %vm1190_vm1, %v3150_v25, -inf }
 0x249   : > { %1372 = vmax.xlane.f32.xlu0 %v1371_v20 }
 0x24a   : > { %1375 = vmax.xlane.f32.xlu1 %v1374_v56 }
 0x259   : > { %v1199_v49 = vpop.xlane.xlu1 %1198 }
 0x25a   : > { %v1385_v10 = vsub.f32 %v2839_v16, %v1199_v49  ;;  %v1193_v32 = vpop.xlane.xlu0 %1192 }
 0x25b   : > { %v1383_v14 = vsub.f32 %v2842_v42, %v1193_v32 }
 0x25c   : > { %v1451_v29 = vmul.f32 1.442695, %v1385_v10 }
 0x25d   : > { %v1447_v52 = vmul.f32 1.442695, %v1383_v14  ;;  %v1202_v62 = vpop.xlane.xlu1 %1201 }
 0x25e   : > { %2326 = vpow2.f32 %v1451_v29  ;;  %v1386_v45 = vsub.f32 %v2845_v19, %v1202_v62  ;;  %v1196_v9 = vpop.xlane.xlu0 %1195 }
 0x25f   : > { %v1384_v0 = vsub.f32 %v2850_v22, %v1196_v9  ;;  %2328 = vpow2.f32 %v1447_v52 }
 0x260   : > { %v1453_v20 = vmul.f32 1.442695, %v1386_v45 }
 0x261   : > { %v1449_v18 = vmul.f32 1.442695, %v1384_v0 }
 0x262   : > { %2330 = vpow2.f32 %v1453_v20  ;;  %v1211_v56 = vpop.xlane.xlu0 %1210 }
 0x263   : > { %v1389_v25 = vsub.f32 %v2859_v27, %v1211_v56  ;;  %v1214_v16 = vpop.xlane.xlu1 %1213  ;;  %2332 = vpow2.f32 %v1449_v18 }
 0x264   : > { %v1390_v42 = vsub.f32 %v2862_v30, %v1214_v16 }
 0x265   : > { %v1459_v32 = vmul.f32 1.442695, %v1389_v25 }
 0x266   : > { %v1461_v49 = vmul.f32 1.442695, %v1390_v42  ;;  %v1205_v10 = vpop.xlane.xlu0 %1204 }
 0x267   : > { %2334 = vpow2.f32 %v1459_v32  ;;  %v1387_v19 = vsub.f32 %v2867_v33, %v1205_v10  ;;  %v1208_v62 = vpop.xlane.xlu1 %1207 }
 0x268   : > { %v3165_v14 = vpop.eup %2326  ;;  %2336 = vpow2.f32 %v1461_v49  ;;  %v1388_v22 = vsub.f32 %v2870_v34, %v1208_v62 }
 0x269   : > { %v1455_v0 = vmul.f32 1.442695, %v1387_v19  ;;  %v1581_v27 = vsel %vm1190_vm1, %v3165_v14, 0.0  ;;  %v3170_v9 = vpop.eup %2328 }
 0x26a   : > { %v1457_v18 = vmul.f32 1.442695, %v1388_v22  ;;  %1582 = vadd.xlane.f32.xlu0 %v1581_v27  ;;  %v1223_v30 = vpop.xlane.xlu0 %1222  ;;  %v1575_v20 = vsel %vm1190_vm1, %v3170_v9, 0.0 }
 0x26b   : > { %2338 = vpow2.f32 %v1455_v0  ;;  %v1393_v25 = vsub.f32 %v2877_v38, %v1223_v30  ;;  %v1226_v29 = vpop.xlane.xlu1 %1225 }
 0x26c   : > { %v3173_v33 = vpop.eup %2330  ;;  %2340 = vpow2.f32 %v1457_v18  ;;  %v1394_v52 = vsub.f32 %v2882_v43, %v1226_v29 }
 0x26d   : > { %v1467_v45 = vmul.f32 1.442695, %v1393_v25  ;;  %v1584_v34 = vsel %vm1190_vm1, %v3173_v33, 0.0  ;;  %v3180_v56 = vpop.eup %2332 }
 0x26e   : > { %v1469_v16 = vmul.f32 1.442695, %v1394_v52  ;;  %1585 = vadd.xlane.f32.xlu1 %v1584_v34  ;;  %1576 = vadd.xlane.f32.xlu0 %v1575_v20  ;;  %v1217_v42 = vpop.xlane.xlu0 %1216  ;;  %v1578_v19 = vsel %vm1190_vm1, %v3180_v56, 0.0 }
 0x26f   : > { %2342 = vpow2.f32 %v1467_v45  ;;  %v1391_v38 = vsub.f32 %v2887_v46, %v1217_v42  ;;  %v1220_v32 = vpop.xlane.xlu1 %1219 }
 0x270   : > { %2344 = vpow2.f32 %v1469_v16  ;;  %v1392_v43 = vsub.f32 %v2890_v47, %v1220_v32 }
 0x271   : > { %v3184_v49 = vpop.eup %2334  ;;  %v1463_v10 = vmul.f32 1.442695, %v1391_v38 }
 0x272   : > { %v3188_v62 = vpop.eup %2336  ;;  %v1465_v22 = vmul.f32 1.442695, %v1392_v43  ;;  %1579 = vadd.xlane.f32.xlu1 %v1578_v19  ;;  %v1235_v0 = vpop.xlane.xlu0 %1234  ;;  %v1593_v27 = vsel %vm1190_vm1, %v3184_v49, 0.0 }
 0x273   : > { %2346 = vpow2.f32 %v1463_v10  ;;  %v1397_v46 = vsub.f32 %v2897_v51, %v1235_v0  ;;  %v1238_v18 = vpop.xlane.xlu1 %1237  ;;  %1594 = vadd.xlane.f32.xlu0 %v1593_v27  ;;  %v1596_v29 = vsel %vm1190_vm1, %v3188_v62, 0.0 }
 0x274   : > { %2348 = vpow2.f32 %v1465_v22  ;;  %v1398_v47 = vsub.f32 %v2902_v55, %v1238_v18 }
 0x275   : > { %v3194_v30 = vpop.eup %2338  ;;  %v1475_v25 = vmul.f32 1.442695, %v1397_v46 }
 0x276   : > { %v3198_v52 = vpop.eup %2340  ;;  %v1477_v45 = vmul.f32 1.442695, %v1398_v47  ;;  %1597 = vadd.xlane.f32.xlu1 %v1596_v29  ;;  %v1229_v34 = vpop.xlane.xlu0 %1228  ;;  %v1587_v20 = vsel %vm1190_vm1, %v3194_v30, 0.0 }
 0x277   : > { %2350 = vpow2.f32 %v1475_v25  ;;  %v1395_v51 = vsub.f32 %v2907_v58, %v1229_v34  ;;  %v1232_v16 = vpop.xlane.xlu1 %1231  ;;  %1588 = vadd.xlane.f32.xlu0 %v1587_v20  ;;  %v1590_v32 = vsel %vm1190_vm1, %v3198_v52, 0.0 }
 0x278   : > { %2352 = vpow2.f32 %v1477_v45  ;;  %v1396_v55 = vsub.f32 %v2910_v59, %v1232_v16 }
 0x279   : > { %v3204_v42 = vpop.eup %2342  ;;  %v1471_v38 = vmul.f32 1.442695, %v1395_v51 }
 0x27a   : > { %v3208_v43 = vpop.eup %2344  ;;  %v1473_v10 = vmul.f32 1.442695, %v1396_v55  ;;  %1591 = vadd.xlane.f32.xlu1 %v1590_v32  ;;  %v1247_v19 = vpop.xlane.xlu0 %1246  ;;  %v1605_v22 = vsel %vm1190_vm1, %v3204_v42, 0.0 }
 0x27b   : > { %2354 = vpow2.f32 %v1471_v38  ;;  %v1401_v58 = vsub.f32 %v2917_v63, %v1247_v19  ;;  %v1250_v0 = vpop.xlane.xlu1 %1249  ;;  %1606 = vadd.xlane.f32.xlu0 %v1605_v22  ;;  %v1608_v18 = vsel %vm1190_vm1, %v3208_v43, 0.0 }
 0x27c   : > { %2356 = vpow2.f32 %v1473_v10  ;;  %v1402_v59 = vsub.f32 %v2922_v3, %v1250_v0 }
 0x27d   : > { %v3214_v27 = vpop.eup %2346  ;;  %v1483_v46 = vmul.f32 1.442695, %v1401_v58 }
 0x27e   : > { %v3218_v47 = vpop.eup %2348  ;;  %v1485_v25 = vmul.f32 1.442695, %v1402_v59  ;;  %1609 = vadd.xlane.f32.xlu1 %v1608_v18  ;;  %v1241_v29 = vpop.xlane.xlu0 %1240  ;;  %v1599_v45 = vsel %vm1190_vm1, %v3214_v27, 0.0 }
 0x27f   : > { %2358 = vpow2.f32 %v1483_v46  ;;  %v1399_v63 = vsub.f32 %v2927_v6, %v1241_v29  ;;  %v1244_v34 = vpop.xlane.xlu1 %1243  ;;  %1600 = vadd.xlane.f32.xlu0 %v1599_v45  ;;  %v1602_v16 = vsel %vm1190_vm1, %v3218_v47, 0.0 }
 0x280   : > { %2360 = vpow2.f32 %v1485_v25  ;;  %v1400_v3 = vsub.f32 %v2930_v7, %v1244_v34 }
 0x281   : > { %v3224_v20 = vpop.eup %2350  ;;  %v1479_v51 = vmul.f32 1.442695, %v1399_v63 }
 0x282   : > { %v3228_v55 = vpop.eup %2352  ;;  %v1481_v38 = vmul.f32 1.442695, %v1400_v3  ;;  %1603 = vadd.xlane.f32.xlu1 %v1602_v16  ;;  %v1259_v32 = vpop.xlane.xlu0 %1258  ;;  %v1617_v10 = vsel %vm1190_vm1, %v3224_v20, 0.0 }
 0x283   : > { %2362 = vpow2.f32 %v1479_v51  ;;  %v1405_v6 = vsub.f32 %v2937_v11, %v1259_v32  ;;  %v1262_v19 = vpop.xlane.xlu1 %1261  ;;  %1618 = vadd.xlane.f32.xlu0 %v1617_v10  ;;  %v1620_v0 = vsel %vm1190_vm1, %v3228_v55, 0.0 }
 0x284   : > { %2364 = vpow2.f32 %v1481_v38  ;;  %v1406_v7 = vsub.f32 %v2942_v17, %v1262_v19 }
 0x285   : > { %v3234_v22 = vpop.eup %2354  ;;  %v1491_v58 = vmul.f32 1.442695, %v1405_v6 }
 0x286   : > { %v3238_v59 = vpop.eup %2356  ;;  %v1493_v46 = vmul.f32 1.442695, %v1406_v7  ;;  %1621 = vadd.xlane.f32.xlu1 %v1620_v0  ;;  %v1253_v18 = vpop.xlane.xlu0 %1252  ;;  %v1611_v25 = vsel %vm1190_vm1, %v3234_v22, 0.0 }
 0x287   : > { %2366 = vpow2.f32 %v1491_v58  ;;  %v1403_v11 = vsub.f32 %v2947_v21, %v1253_v18  ;;  %v1256_v29 = vpop.xlane.xlu1 %1255  ;;  %1612 = vadd.xlane.f32.xlu0 %v1611_v25  ;;  %v1614_v34 = vsel %vm1190_vm1, %v3238_v59, 0.0 }
 0x288   : > { %2368 = vpow2.f32 %v1493_v46  ;;  %v1404_v17 = vsub.f32 %v2950_v23, %v1256_v29 }
 0x289   : > { %v3244_v45 = vpop.eup %2358  ;;  %v1487_v63 = vmul.f32 1.442695, %v1403_v11 }
 0x28a   : > { %v3248_v3 = vpop.eup %2360  ;;  %v1489_v51 = vmul.f32 1.442695, %v1404_v17  ;;  %1615 = vadd.xlane.f32.xlu1 %v1614_v34  ;;  %v1271_v16 = vpop.xlane.xlu0 %1270  ;;  %v1629_v38 = vsel %vm1190_vm1, %v3244_v45, 0.0 }
 0x28b   : > { %2370 = vpow2.f32 %v1487_v63  ;;  %v1409_v21 = vsub.f32 %v2957_v28, %v1271_v16  ;;  %v1274_v32 = vpop.xlane.xlu1 %1273  ;;  %1630 = vadd.xlane.f32.xlu0 %v1629_v38  ;;  %v1632_v19 = vsel %vm1190_vm1, %v3248_v3, 0.0 }
 0x28c   : > { %2372 = vpow2.f32 %v1489_v51  ;;  %v1410_v23 = vsub.f32 %v2962_v35, %v1274_v32 }
 0x28d   : > { %v3254_v10 = vpop.eup %2362  ;;  %v1499_v6 = vmul.f32 1.442695, %v1409_v21 }
 0x28e   : > { %v3258_v7 = vpop.eup %2364  ;;  %v1501_v58 = vmul.f32 1.442695, %v1410_v23  ;;  %1633 = vadd.xlane.f32.xlu1 %v1632_v19  ;;  %v1265_v0 = vpop.xlane.xlu0 %1264  ;;  %v1623_v46 = vsel %vm1190_vm1, %v3254_v10, 0.0 }
 0x28f   : > { %2374 = vpow2.f32 %v1499_v6  ;;  %v1407_v28 = vsub.f32 %v2967_v39, %v1265_v0  ;;  %v1268_v18 = vpop.xlane.xlu1 %1267  ;;  %1624 = vadd.xlane.f32.xlu0 %v1623_v46  ;;  %v1626_v29 = vsel %vm1190_vm1, %v3258_v7, 0.0 }
 0x290   : > { %2376 = vpow2.f32 %v1501_v58  ;;  %v1408_v35 = vsub.f32 %v2970_v40, %v1268_v18 }
 0x291   : > { %v3264_v25 = vpop.eup %2366  ;;  %v1495_v11 = vmul.f32 1.442695, %v1407_v28 }
 0x292   : > { %v3268_v17 = vpop.eup %2368  ;;  %v1497_v63 = vmul.f32 1.442695, %v1408_v35  ;;  %1627 = vadd.xlane.f32.xlu1 %v1626_v29  ;;  %v1283_v34 = vpop.xlane.xlu0 %1282  ;;  %v1641_v51 = vsel %vm1190_vm1, %v3264_v25, 0.0 }
 0x293   : > { %2378 = vpow2.f32 %v1495_v11  ;;  %v1413_v39 = vsub.f32 %v2977_v48, %v1283_v34  ;;  %v1286_v16 = vpop.xlane.xlu1 %1285  ;;  %1642 = vadd.xlane.f32.xlu0 %v1641_v51  ;;  %v1644_v32 = vsel %vm1190_vm1, %v3268_v17, 0.0 }
 0x294   : > { %2380 = vpow2.f32 %v1497_v63  ;;  %v1414_v40 = vsub.f32 %v2982_v53, %v1286_v16 }
 0x295   : > { %v3274_v38 = vpop.eup %2370  ;;  %v1507_v21 = vmul.f32 1.442695, %v1413_v39 }
 0x296   : > { %v3278_v23 = vpop.eup %2372  ;;  %v1509_v6 = vmul.f32 1.442695, %v1414_v40  ;;  %1645 = vadd.xlane.f32.xlu1 %v1644_v32  ;;  %v1277_v19 = vpop.xlane.xlu0 %1276  ;;  %v1635_v58 = vsel %vm1190_vm1, %v3274_v38, 0.0 }
 0x297   : > { %2382 = vpow2.f32 %v1507_v21  ;;  %v1411_v48 = vsub.f32 %v2987_v57, %v1277_v19  ;;  %v1280_v0 = vpop.xlane.xlu1 %1279  ;;  %1636 = vadd.xlane.f32.xlu0 %v1635_v58  ;;  %v1638_v18 = vsel %vm1190_vm1, %v3278_v23, 0.0 }
 0x298   : > { %2384 = vpow2.f32 %v1509_v6  ;;  %v1412_v53 = vsub.f32 %v2990_v60, %v1280_v0 }
 0x299   : > { %v3284_v46 = vpop.eup %2374  ;;  %v1503_v28 = vmul.f32 1.442695, %v1411_v48 }
 0x29a   : > { %v3288_v35 = vpop.eup %2376  ;;  %v1505_v11 = vmul.f32 1.442695, %v1412_v53  ;;  %1639 = vadd.xlane.f32.xlu1 %v1638_v18  ;;  %v1295_v29 = vpop.xlane.xlu0 %1294  ;;  %v1653_v63 = vsel %vm1190_vm1, %v3284_v46, 0.0 }
 0x29b   : > { %2386 = vpow2.f32 %v1503_v28  ;;  %v1417_v57 = vsub.f32 %v2997_v1, %v1295_v29  ;;  %v1298_v34 = vpop.xlane.xlu1 %1297  ;;  %1654 = vadd.xlane.f32.xlu0 %v1653_v63  ;;  %v1656_v16 = vsel %vm1190_vm1, %v3288_v35, 0.0 }
 0x29c   : > { %2388 = vpow2.f32 %v1505_v11  ;;  %v1418_v60 = vsub.f32 %v3002_v8, %v1298_v34 }
 0x29d   : > { %v3294_v51 = vpop.eup %2378  ;;  %v1515_v39 = vmul.f32 1.442695, %v1417_v57 }
 0x29e   : > { %v3298_v40 = vpop.eup %2380  ;;  %v1517_v21 = vmul.f32 1.442695, %v1418_v60  ;;  %1657 = vadd.xlane.f32.xlu1 %v1656_v16  ;;  %v1289_v32 = vpop.xlane.xlu0 %1288  ;;  %v1647_v6 = vsel %vm1190_vm1, %v3294_v51, 0.0 }
 0x29f   : > { %2390 = vpow2.f32 %v1515_v39  ;;  %v1415_v1 = vsub.f32 %v3007_v12, %v1289_v32  ;;  %v1292_v19 = vpop.xlane.xlu1 %1291  ;;  %1648 = vadd.xlane.f32.xlu0 %v1647_v6  ;;  %v1650_v0 = vsel %vm1190_vm1, %v3298_v40, 0.0 }
 0x2a0   : > { %2392 = vpow2.f32 %v1517_v21  ;;  %v1416_v8 = vsub.f32 %v3010_v13, %v1292_v19 }
 0x2a1   : > { %v3304_v58 = vpop.eup %2382  ;;  %v1511_v48 = vmul.f32 1.442695, %v1415_v1 }
 0x2a2   : > { %v3308_v53 = vpop.eup %2384  ;;  %v1513_v28 = vmul.f32 1.442695, %v1416_v8  ;;  %1651 = vadd.xlane.f32.xlu1 %v1650_v0  ;;  %v1307_v18 = vpop.xlane.xlu0 %1306  ;;  %v1665_v11 = vsel %vm1190_vm1, %v3304_v58, 0.0 }
 0x2a3   : > { %2394 = vpow2.f32 %v1511_v48  ;;  %v1421_v12 = vsub.f32 %v3017_v24, %v1307_v18  ;;  %v1310_v29 = vpop.xlane.xlu1 %1309  ;;  %1666 = vadd.xlane.f32.xlu0 %v1665_v11  ;;  %v1668_v34 = vsel %vm1190_vm1, %v3308_v53, 0.0 }
 0x2a4   : > { %2396 = vpow2.f32 %v1513_v28  ;;  %v1422_v13 = vsub.f32 %v3022_v31, %v1310_v29 }
 0x2a5   : > { %v3314_v63 = vpop.eup %2386  ;;  %v1523_v57 = vmul.f32 1.442695, %v1421_v12 }
 0x2a6   : > { %v3318_v60 = vpop.eup %2388  ;;  %v1525_v39 = vmul.f32 1.442695, %v1422_v13  ;;  %1669 = vadd.xlane.f32.xlu1 %v1668_v34  ;;  %v1301_v16 = vpop.xlane.xlu0 %1300  ;;  %v1659_v21 = vsel %vm1190_vm1, %v3314_v63, 0.0 }
 0x2a7   : > { %2398 = vpow2.f32 %v1523_v57  ;;  %v1419_v24 = vsub.f32 %v3027_v37, %v1301_v16  ;;  %v1304_v32 = vpop.xlane.xlu1 %1303  ;;  %1660 = vadd.xlane.f32.xlu0 %v1659_v21  ;;  %v1662_v19 = vsel %vm1190_vm1, %v3318_v60, 0.0 }
 0x2a8   : > { %2400 = vpow2.f32 %v1525_v39  ;;  %v1420_v31 = vsub.f32 %v3030_v41, %v1304_v32 }
 0x2a9   : > { %v3324_v6 = vpop.eup %2390  ;;  %v1519_v1 = vmul.f32 1.442695, %v1419_v24 }
 0x2aa   : > { %v3328_v8 = vpop.eup %2392  ;;  %v1521_v48 = vmul.f32 1.442695, %v1420_v31  ;;  %1663 = vadd.xlane.f32.xlu1 %v1662_v19  ;;  %v1319_v0 = vpop.xlane.xlu0 %1318  ;;  %v1677_v28 = vsel %vm1190_vm1, %v3324_v6, 0.0 }
 0x2ab   : > { %2402 = vpow2.f32 %v1519_v1  ;;  %v1425_v37 = vsub.f32 %v3037_v50, %v1319_v0  ;;  %v1322_v18 = vpop.xlane.xlu1 %1321  ;;  %1678 = vadd.xlane.f32.xlu0 %v1677_v28  ;;  %v1680_v29 = vsel %vm1190_vm1, %v3328_v8, 0.0 }
 0x2ac   : > { %2404 = vpow2.f32 %v1521_v48  ;;  %v1426_v41 = vsub.f32 %v3042_v61, %v1322_v18 }
 0x2ad   : > { %v3334_v11 = vpop.eup %2394  ;;  %v1531_v12 = vmul.f32 1.442695, %v1425_v37 }
 0x2ae   : > { %v3338_v13 = vpop.eup %2396  ;;  %v1533_v57 = vmul.f32 1.442695, %v1426_v41  ;;  %1681 = vadd.xlane.f32.xlu1 %v1680_v29  ;;  %v1313_v34 = vpop.xlane.xlu0 %1312  ;;  %v1671_v39 = vsel %vm1190_vm1, %v3334_v11, 0.0 }
 0x2af   : > { %2406 = vpow2.f32 %v1531_v12  ;;  %v1423_v50 = vsub.f32 %v3047_v2, %v1313_v34  ;;  %v1316_v16 = vpop.xlane.xlu1 %1315  ;;  %1672 = vadd.xlane.f32.xlu0 %v1671_v39  ;;  %v1674_v32 = vsel %vm1190_vm1, %v3338_v13, 0.0 }
 0x2b0   : > { %2408 = vpow2.f32 %v1533_v57  ;;  %v1424_v61 = vsub.f32 %v3050_v4, %v1316_v16 }
 0x2b1   : > { %v3344_v21 = vpop.eup %2398  ;;  %v1527_v24 = vmul.f32 1.442695, %v1423_v50 }
 0x2b2   : > { %v3348_v31 = vpop.eup %2400  ;;  %v1529_v1 = vmul.f32 1.442695, %v1424_v61  ;;  %1675 = vadd.xlane.f32.xlu1 %v1674_v32  ;;  %v1331_v19 = vpop.xlane.xlu0 %1330  ;;  %v1689_v48 = vsel %vm1190_vm1, %v3344_v21, 0.0 }
 0x2b3   : > { %2410 = vpow2.f32 %v1527_v24  ;;  %v1429_v2 = vsub.f32 %v3057_v15, %v1331_v19  ;;  %v1334_v0 = vpop.xlane.xlu1 %1333  ;;  %1690 = vadd.xlane.f32.xlu0 %v1689_v48  ;;  %v1692_v18 = vsel %vm1190_vm1, %v3348_v31, 0.0 }
 0x2b4   : > { %2412 = vpow2.f32 %v1529_v1  ;;  %v1430_v4 = vsub.f32 %v3062_v26, %v1334_v0 }
 0x2b5   : > { %v3354_v28 = vpop.eup %2402  ;;  %v1539_v37 = vmul.f32 1.442695, %v1429_v2 }
 0x2b6   : > { %v3358_v41 = vpop.eup %2404  ;;  %v1541_v12 = vmul.f32 1.442695, %v1430_v4  ;;  %1693 = vadd.xlane.f32.xlu1 %v1692_v18  ;;  %v1325_v29 = vpop.xlane.xlu0 %1324  ;;  %v1683_v57 = vsel %vm1190_vm1, %v3354_v28, 0.0 }
 0x2b7   : > { %2414 = vpow2.f32 %v1539_v37  ;;  %v1427_v15 = vsub.f32 %v3067_v36, %v1325_v29  ;;  %v1328_v34 = vpop.xlane.xlu1 %1327  ;;  %1684 = vadd.xlane.f32.xlu0 %v1683_v57  ;;  %v1686_v16 = vsel %vm1190_vm1, %v3358_v41, 0.0 }
 0x2b8   : > { %2416 = vpow2.f32 %v1541_v12  ;;  %v1428_v26 = vsub.f32 %v3070_v44, %v1328_v34 }
 0x2b9   : > { %v3364_v39 = vpop.eup %2406  ;;  %v1535_v50 = vmul.f32 1.442695, %v1427_v15 }
 0x2ba   : > { %v3368_v61 = vpop.eup %2408  ;;  %v1537_v24 = vmul.f32 1.442695, %v1428_v26  ;;  %1687 = vadd.xlane.f32.xlu1 %v1686_v16  ;;  %v1343_v32 = vpop.xlane.xlu0 %1342  ;;  %v1701_v1 = vsel %vm1190_vm1, %v3364_v39, 0.0 }
 0x2bb   : > { %2418 = vpow2.f32 %v1535_v50  ;;  %v1433_v36 = vsub.f32 %v3077_v54, %v1343_v32  ;;  %v1346_v19 = vpop.xlane.xlu1 %1345  ;;  %1702 = vadd.xlane.f32.xlu0 %v1701_v1  ;;  %v1704_v0 = vsel %vm1190_vm1, %v3368_v61, 0.0  ;;  %v3724_v54 = vld [vmem:[#allocation2_spill] sm:$0xff] }
 0x2bc   : > { %2420 = vpow2.f32 %v1537_v24  ;;  %v1434_v44 = vsub.f32 %v3082_v5, %v1346_v19  ;;  %v3725_v5 = vld [vmem:[#allocation3_spill] sm:$0xff] }
 0x2bd   : > { %v3374_v48 = vpop.eup %2410  ;;  %v1547_v2 = vmul.f32 1.442695, %v1433_v36  ;;  %v3727_v36 = vld [vmem:[#allocation4_spill] sm:$0xff] }
 0x2be   : > { %v3378_v4 = vpop.eup %2412  ;;  %v1549_v37 = vmul.f32 1.442695, %v1434_v44  ;;  %1705 = vadd.xlane.f32.xlu1 %v1704_v0  ;;  %v1337_v18 = vpop.xlane.xlu0 %1336  ;;  %v1695_v12 = vsel %vm1190_vm1, %v3374_v48, 0.0 }
 0x2bf   : > { %2422 = vpow2.f32 %v1547_v2  ;;  %v1431_v29 = vsub.f32 %v3724_v54, %v1337_v18  ;;  %v1340_v57 = vpop.xlane.xlu1 %1339  ;;  %1696 = vadd.xlane.f32.xlu0 %v1695_v12  ;;  %v1698_v50 = vsel %vm1190_vm1, %v3378_v4, 0.0  ;;  %v3728_v2 = vld [vmem:[#allocation5_spill] sm:$0xff] }
 0x2c0   : > { %2424 = vpow2.f32 %v1549_v37  ;;  %v1432_v15 = vsub.f32 %v3725_v5, %v1340_v57 }
 0x2c1   : > { %v3384_v34 = vpop.eup %2414  ;;  %v1543_v26 = vmul.f32 1.442695, %v1431_v29 }
 0x2c2   : > { %v3388_v16 = vpop.eup %2416  ;;  %v1545_v24 = vmul.f32 1.442695, %v1432_v15  ;;  %1699 = vadd.xlane.f32.xlu1 %v1698_v50  ;;  %v1355_v32 = vpop.xlane.xlu0 %1354  ;;  %v1713_v1 = vsel %vm1190_vm1, %v3384_v34, 0.0  ;;  %v3731_v15 = vld [vmem:[#allocation6_spill] sm:$0xff] }
 0x2c3   : > { %3726 = vst [vmem:[#allocation2_spill] sm:$0xff] %v3388_v16  ;;  %2426 = vpow2.f32 %v1543_v26  ;;  %v1437_v19 = vsub.f32 %v3727_v36, %v1355_v32  ;;  %v1358_v44 = vpop.xlane.xlu1 %1357  ;;  %1714 = vadd.xlane.f32.xlu0 %v1713_v1  ;;  %v1716_v12 = vsel %vm1190_vm1, %v3388_v16, 0.0 }
 0x2c4   : > { %2428 = vpow2.f32 %v1545_v24  ;;  %v1438_v0 = vsub.f32 %v3728_v2, %v1358_v44  ;;  %v3732_v24 = vld [vmem:[#allocation7_spill] sm:$0xff] }
 0x2c5   : > { %v3394_v37 = vpop.eup %2418  ;;  %v1555_v18 = vmul.f32 1.442695, %v1437_v19 }
 0x2c6   : > { %3729 = vst [vmem:[#allocation3_spill] sm:$0xff] %v3394_v37  ;;  %v3398_v54 = vpop.eup %2420  ;;  %v1557_v29 = vmul.f32 1.442695, %v1438_v0  ;;  %1717 = vadd.xlane.f32.xlu1 %v1716_v12  ;;  %v1349_v57 = vpop.xlane.xlu0 %1348  ;;  %v1707_v5 = vsel %vm1190_vm1, %v3394_v37, 0.0  ;;  %v3735_v12 = vld [vmem:[#allocation8_spill] sm:$0xff] }
 0x2c7   : > { %3730 = vst [vmem:[#allocation4_spill] sm:$0xff] %v3398_v54  ;;  %2430 = vpow2.f32 %v1555_v18  ;;  %v1435_v26 = vsub.f32 %v3731_v15, %v1349_v57  ;;  %v1352_v50 = vpop.xlane.xlu1 %1351  ;;  %1708 = vadd.xlane.f32.xlu0 %v1707_v5  ;;  %v1710_v19 = vsel %vm1190_vm1, %v3398_v54, 0.0  ;;  %v3736_v5 = vld [vmem:[#allocation9_spill] sm:$0xff] }
 0x2c8   : > { %2432 = vpow2.f32 %v1557_v29  ;;  %v1436_v32 = vsub.f32 %v3732_v24, %v1352_v50 }
 0x2c9   : > { %v3404_v1 = vpop.eup %2422  ;;  %v1551_v36 = vmul.f32 1.442695, %v1435_v26 }
 0x2ca   : > { %3733 = vst [vmem:[#allocation5_spill] sm:$0xff] %v3404_v1  ;;  %v3408_v44 = vpop.eup %2424  ;;  %v1553_v2 = vmul.f32 1.442695, %v1436_v32  ;;  %1711 = vadd.xlane.f32.xlu1 %v1710_v19  ;;  %v1367_v0 = vpop.xlane.xlu0 %1366  ;;  %v1725_v18 = vsel %vm1190_vm1, %v3404_v1, 0.0 }
 0x2cb   : > { %3734 = vst [vmem:[#allocation6_spill] sm:$0xff] %v3408_v44  ;;  %2434 = vpow2.f32 %v1551_v36  ;;  %v1441_v57 = vsub.f32 %v3735_v12, %v1367_v0  ;;  %v1370_v29 = vpop.xlane.xlu1 %1369  ;;  %1726 = vadd.xlane.f32.xlu0 %v1725_v18  ;;  %v1728_v24 = vsel %vm1190_vm1, %v3408_v44, 0.0  ;;  %v3739_v0 = vld [vmem:[#allocation10_spill] sm:$0xff]  ;;  %v3740_v12 = vld [vmem:[#allocation11_spill] sm:$0xff] }
 0x2cc   : > { %2436 = vpow2.f32 %v1553_v2  ;;  %v1442_v15 = vsub.f32 %v3736_v5, %v1370_v29 }
 0x2cd   : > { %v3414_v26 = vpop.eup %2426  ;;  %v1563_v50 = vmul.f32 1.442695, %v1441_v57 }
 0x2ce   : > { %3737 = vst [vmem:[#allocation7_spill] sm:$0xff] %v3414_v26  ;;  %v3418_v32 = vpop.eup %2428  ;;  %v1565_v19 = vmul.f32 1.442695, %v1442_v15  ;;  %1729 = vadd.xlane.f32.xlu1 %v1728_v24  ;;  %v1361_v54 = vpop.xlane.xlu0 %1360  ;;  %v1719_v36 = vsel %vm1190_vm1, %v3414_v26, 0.0 }
 0x2cf   : > { %3738 = vst [vmem:[#allocation8_spill] sm:$0xff] %v3418_v32  ;;  %2438 = vpow2.f32 %v1563_v50  ;;  %v1439_v18 = vsub.f32 %v3739_v0, %v1361_v54  ;;  %v1364_v2 = vpop.xlane.xlu1 %1363  ;;  %1720 = vadd.xlane.f32.xlu0 %v1719_v36  ;;  %v1722_v44 = vsel %vm1190_vm1, %v3418_v32, 0.0  ;;  %v3743_v36 = vld [vmem:[#allocation12_spill] sm:$0xff] }
 0x2d0   : > { %2440 = vpow2.f32 %v1565_v19  ;;  %v1440_v29 = vsub.f32 %v3740_v12, %v1364_v2  ;;  %v3744_v12 = vld [vmem:[#allocation13_spill] sm:$0xff] }
 0x2d1   : > { %v3424_v57 = vpop.eup %2430  ;;  %v1559_v5 = vmul.f32 1.442695, %v1439_v18 }
 0x2d2   : > { %3741 = vst [vmem:[#allocation9_spill] sm:$0xff] %v3424_v57  ;;  %v3428_v15 = vpop.eup %2432  ;;  %v1561_v24 = vmul.f32 1.442695, %v1440_v29  ;;  %1723 = vadd.xlane.f32.xlu1 %v1722_v44  ;;  %v1379_v1 = vpop.xlane.xlu0 %1378  ;;  %v1737_v50 = vsel %vm1190_vm1, %v3424_v57, 0.0 }
 0x2d3   : > { %3742 = vst [vmem:[#allocation10_spill] sm:$0xff] %v3428_v15  ;;  %2442 = vpow2.f32 %v1559_v5  ;;  %v1382_v54 = vpop.xlane.xlu1 %1381  ;;  %1738 = vadd.xlane.f32.xlu0 %v1737_v50  ;;  %v1445_v0 = vsub.f32 %v3743_v36, %v1379_v1  ;;  %v1740_v18 = vsel %vm1190_vm1, %v3428_v15, 0.0  ;;  %v3745_v5 = vld [vmem:[#allocation14_spill] sm:$0xff] }
 0x2d4   : > { %2444 = vpow2.f32 %v1561_v24  ;;  %v1446_v29 = vsub.f32 %v3744_v12, %v1382_v54  ;;  %v3746_v24 = vld [vmem:[#allocation15_spill] sm:$0xff] }
 0x2d5   : > { %v3432_v19 = vpop.eup %2434  ;;  %v1571_v1 = vmul.f32 1.442695, %v1445_v0 }
 0x2d6   : > { %v3437_v2 = vpop.eup %2436  ;;  %1741 = vadd.xlane.f32.xlu1 %v1740_v18  ;;  %v1373_v44 = vpop.xlane.xlu0 %1372  ;;  %v1731_v57 = vsel %vm1190_vm1, %v3432_v19, 0.0  ;;  %v1573_v54 = vmul.f32 1.442695, %v1446_v29 }
 0x2d7   : > { %v1443_v32 = vsub.f32 %v3745_v5, %v1373_v44  ;;  %v1376_v50 = vpop.xlane.xlu1 %1375  ;;  %1732 = vadd.xlane.f32.xlu0 %v1731_v57  ;;  %v1734_v15 = vsel %vm1190_vm1, %v3437_v2, 0.0 }
 0x2d8   : > { %v1444_v26 = vsub.f32 %v3746_v24, %v1376_v50 }
 0x2d9   : > { %v3444_v37 = vpop.eup %2438  ;;  %v1567_v36 = vmul.f32 1.442695, %v1443_v32 }
 0x2da   : > { %v3448_v16 = vpop.eup %2440  ;;  %v1569_v18 = vmul.f32 1.442695, %v1444_v26  ;;  %1735 = vadd.xlane.f32.xlu1 %v1734_v15  ;;  %v1749_v12 = vsel %vm1190_vm1, %v3444_v37, 0.0 }
 0x2db   : > { %2446 = vpow2.f32 %v1567_v36  ;;  %1750 = vadd.xlane.f32.xlu0 %v1749_v12  ;;  %v1752_v32 = vsel %vm1190_vm1, %v3448_v16, 0.0 }
 0x2dc   : > { %2448 = vpow2.f32 %v1569_v18 }
 0x2dd   : > { %v3452_v57 = vpop.eup %2442  ;;  %2450 = vpow2.f32 %v1571_v1 }
 0x2de   : > { %v3456_v0 = vpop.eup %2444  ;;  %2452 = vpow2.f32 %v1573_v54  ;;  %1753 = vadd.xlane.f32.xlu1 %v1752_v32  ;;  %v1743_v26 = vsel %vm1190_vm1, %v3452_v57, 0.0 }
 0x2df   : > { %1744 = vadd.xlane.f32.xlu0 %v1743_v26  ;;  %v1746_v15 = vsel %vm1190_vm1, %v3456_v0, 0.0 }
 0x2e2   : > { %1747 = vadd.xlane.f32.xlu1 %v1746_v15 }
 0x2e5   : > { %v3462_v29 = vpop.eup %2446 }
 0x2e6   : > { %v3464_v44 = vpop.eup %2448  ;;  %v1755_v5 = vsel %vm1190_vm1, %v3462_v29, 0.0 }
 0x2e7   : > { %v3468_v50 = vpop.eup %2450  ;;  %1756 = vadd.xlane.f32.xlu0 %v1755_v5  ;;  %v1758_v24 = vsel %vm1190_vm1, %v3464_v44, 0.0 }
 0x2e8   : > { %v3472_v1 = vpop.eup %2452  ;;  %1759 = vadd.xlane.f32.xlu1 %v1758_v24  ;;  %v1761_v36 = vsel %vm1190_vm1, %v3468_v50, 0.0 }
 0x2e9   : > { %3747 = vst [vmem:[#allocation11_spill] sm:$0xff] %v3472_v1  ;;  %v1764_v54 = vsel %vm1190_vm1, %v3472_v1, 0.0 }
 0x2eb   : > { %1762 = vadd.xlane.f32.xlu0 %v1761_v36 }
 0x2ec   : > { %1765 = vadd.xlane.f32.xlu1 %v1764_v54 }
 0x2f7   : > { %v1583_v18 = vpop.xlane.xlu0 %1582 }
 0x2f8   : > { %2454 = vrcp.f32 %v1583_v18 }
 0x2fb   : > { %v1586_v12 = vpop.xlane.xlu1 %1585  ;;  %v1577_v32 = vpop.xlane.xlu0 %1576 }
 0x2fc   : > { %2456 = vrcp.f32 %v1586_v12 }
 0x2fd   : > { %2458 = vrcp.f32 %v1577_v32 }
 0x2ff   : > { %v1580_v26 = vpop.xlane.xlu1 %1579 }
 0x300   : > { %2460 = vrcp.f32 %v1580_v26  ;;  %v1595_v15 = vpop.xlane.xlu0 %1594 }
 0x301   : > { %2462 = vrcp.f32 %v1595_v15 }
 0x302   : > { %v2455_v5 = vpop.eup %2454 }
 0x303   : > { %v1772_v24 = vmul.f32 %v2455_v5, %v3165_v14  ;;  %v1598_v36 = vpop.xlane.xlu1 %1597 }
 0x304   : > { %2464 = vrcp.f32 %v1598_v36  ;;  %v1589_v54 = vpop.xlane.xlu0 %1588 }
 0x305   : > { %1897 = vst.msk [vmem:[%s3483_s28 + $0x10] sm:$0xff] %vm1190_vm1, %v1772_v24  ;;  %2466 = vrcp.f32 %v1589_v54 }
 0x306   : > { %v2457_v18 = vpop.eup %2456 }
 0x307   : > { %v2459_v12 = vpop.eup %2458  ;;  %v1774_v32 = vmul.f32 %v2457_v18, %v3173_v33  ;;  %v1592_v26 = vpop.xlane.xlu1 %1591 }
 0x308   : > { %v1768_v15 = vmul.f32 %v2459_v12, %v3170_v9  ;;  %2468 = vrcp.f32 %v1592_v26  ;;  %v1607_v1 = vpop.xlane.xlu0 %1606 }
 0x309   : > { %1898 = vst.msk [vmem:[%s3483_s28 + $0x18] sm:$0xff] %vm1190_vm1, %v1774_v32  ;;  %2470 = vrcp.f32 %v1607_v1 }
 0x30a   : > { %v2461_v14 = vpop.eup %2460  ;;  %1895 = vst.msk [vmem:[%s3483_s28] sm:$0xff] %vm1190_vm1, %v1768_v15 }
 0x30b   : > { %v2463_v5 = vpop.eup %2462  ;;  %v1770_v24 = vmul.f32 %v2461_v14, %v3180_v56  ;;  %v1610_v36 = vpop.xlane.xlu1 %1609 }
 0x30c   : > { %v1780_v54 = vmul.f32 %v2463_v5, %v3184_v49  ;;  %2472 = vrcp.f32 %v1610_v36  ;;  %v1601_v33 = vpop.xlane.xlu0 %1600 }
 0x30d   : > { %1896 = vst.msk [vmem:[%s3483_s28 + $0x8] sm:$0xff] %vm1190_vm1, %v1770_v24  ;;  %2474 = vrcp.f32 %v1601_v33 }
 0x30e   : > { %v2465_v9 = vpop.eup %2464  ;;  %1901 = vst.msk [vmem:[%s3483_s28 + $0x30] sm:$0xff] %vm1190_vm1, %v1780_v54 }
 0x30f   : > { %v2467_v1 = vpop.eup %2466  ;;  %v1782_v18 = vmul.f32 %v2465_v9, %v3188_v62  ;;  %v1604_v12 = vpop.xlane.xlu1 %1603 }
 0x310   : > { %v1776_v32 = vmul.f32 %v2467_v1, %v3194_v30  ;;  %2476 = vrcp.f32 %v1604_v12  ;;  %v1619_v56 = vpop.xlane.xlu0 %1618 }
 0x311   : > { %1902 = vst.msk [vmem:[%s3483_s28 + $0x38] sm:$0xff] %vm1190_vm1, %v1782_v18  ;;  %2478 = vrcp.f32 %v1619_v56 }
 0x312   : > { %v2469_v49 = vpop.eup %2468  ;;  %1899 = vst.msk [vmem:[%s3483_s28 + $0x20] sm:$0xff] %vm1190_vm1, %v1776_v32 }
 0x313   : > { %v2471_v26 = vpop.eup %2470  ;;  %v1778_v15 = vmul.f32 %v2469_v49, %v3198_v52  ;;  %v1622_v14 = vpop.xlane.xlu1 %1621 }
 0x314   : > { %v1788_v5 = vmul.f32 %v2471_v26, %v3204_v42  ;;  %2480 = vrcp.f32 %v1622_v14  ;;  %v1613_v62 = vpop.xlane.xlu0 %1612 }
 0x315   : > { %1900 = vst.msk [vmem:[%s3483_s28 + $0x28] sm:$0xff] %vm1190_vm1, %v1778_v15  ;;  %2482 = vrcp.f32 %v1613_v62 }
 0x316   : > { %v2473_v30 = vpop.eup %2472  ;;  %1905 = vst.msk [vmem:[%s3483_s28 + $0x50] sm:$0xff] %vm1190_vm1, %v1788_v5 }
 0x317   : > { %v2475_v24 = vpop.eup %2474  ;;  %v1790_v36 = vmul.f32 %v2473_v30, %v3208_v43  ;;  %v1616_v54 = vpop.xlane.xlu1 %1615 }
 0x318   : > { %v1784_v33 = vmul.f32 %v2475_v24, %v3214_v27  ;;  %2484 = vrcp.f32 %v1616_v54  ;;  %v1631_v52 = vpop.xlane.xlu0 %1630 }
 0x319   : > { %1906 = vst.msk [vmem:[%s3483_s28 + $0x58] sm:$0xff] %vm1190_vm1, %v1790_v36  ;;  %2486 = vrcp.f32 %v1631_v52 }
 0x31a   : > { %v2477_v42 = vpop.eup %2476  ;;  %1903 = vst.msk [vmem:[%s3483_s28 + $0x40] sm:$0xff] %vm1190_vm1, %v1784_v33 }
 0x31b   : > { %v2479_v9 = vpop.eup %2478  ;;  %v1786_v1 = vmul.f32 %v2477_v42, %v3218_v47  ;;  %v1634_v18 = vpop.xlane.xlu1 %1633 }
 0x31c   : > { %v1796_v12 = vmul.f32 %v2479_v9, %v3224_v20  ;;  %2488 = vrcp.f32 %v1634_v18  ;;  %v1625_v43 = vpop.xlane.xlu0 %1624 }
 0x31d   : > { %1904 = vst.msk [vmem:[%s3483_s28 + $0x48] sm:$0xff] %vm1190_vm1, %v1786_v1  ;;  %2490 = vrcp.f32 %v1625_v43 }
 0x31e   : > { %v2481_v27 = vpop.eup %2480  ;;  %1909 = vst.msk [vmem:[%s3483_s28 + $0x70] sm:$0xff] %vm1190_vm1, %v1796_v12 }
 0x31f   : > { %v2483_v32 = vpop.eup %2482  ;;  %v1798_v56 = vmul.f32 %v2481_v27, %v3228_v55  ;;  %v1628_v49 = vpop.xlane.xlu1 %1627 }
 0x320   : > { %v1792_v26 = vmul.f32 %v2483_v32, %v3234_v22  ;;  %2492 = vrcp.f32 %v1628_v49  ;;  %v1643_v47 = vpop.xlane.xlu0 %1642 }
 0x321   : > { %1910 = vst.msk [vmem:[%s3483_s28 + $0x78] sm:$0xff] %vm1190_vm1, %v1798_v56  ;;  %2494 = vrcp.f32 %v1643_v47 }
 0x322   : > { %v2485_v20 = vpop.eup %2484  ;;  %1907 = vst.msk [vmem:[%s3483_s28 + $0x60] sm:$0xff] %vm1190_vm1, %v1792_v26 }
 0x323   : > { %v2487_v15 = vpop.eup %2486  ;;  %v1794_v14 = vmul.f32 %v2485_v20, %v3238_v59  ;;  %v1646_v5 = vpop.xlane.xlu1 %1645 }
 0x324   : > { %v1804_v62 = vmul.f32 %v2487_v15, %v3244_v45  ;;  %2496 = vrcp.f32 %v1646_v5  ;;  %v1637_v55 = vpop.xlane.xlu0 %1636 }
 0x325   : > { %1908 = vst.msk [vmem:[%s3483_s28 + $0x68] sm:$0xff] %vm1190_vm1, %v1794_v14  ;;  %2498 = vrcp.f32 %v1637_v55 }
 0x326   : > { %v2489_v22 = vpop.eup %2488  ;;  %1913 = vst.msk [vmem:[%s3483_s28 + $0x90] sm:$0xff] %vm1190_vm1, %v1804_v62 }
 0x327   : > { %v2491_v30 = vpop.eup %2490  ;;  %v1806_v24 = vmul.f32 %v2489_v22, %v3248_v3  ;;  %v1640_v36 = vpop.xlane.xlu1 %1639 }
 0x328   : > { %v1800_v54 = vmul.f32 %v2491_v30, %v3254_v10  ;;  %2500 = vrcp.f32 %v1640_v36  ;;  %v1655_v59 = vpop.xlane.xlu0 %1654 }
 0x329   : > { %1914 = vst.msk [vmem:[%s3483_s28 + $0x98] sm:$0xff] %vm1190_vm1, %v1806_v24  ;;  %2502 = vrcp.f32 %v1655_v59 }
 0x32a   : > { %v2493_v45 = vpop.eup %2492  ;;  %1911 = vst.msk [vmem:[%s3483_s28 + $0x80] sm:$0xff] %vm1190_vm1, %v1800_v54 }
 0x32b   : > { %v2495_v33 = vpop.eup %2494  ;;  %v1802_v52 = vmul.f32 %v2493_v45, %v3258_v7  ;;  %v1658_v42 = vpop.xlane.xlu1 %1657 }
 0x32c   : > { %v1812_v9 = vmul.f32 %v2495_v33, %v3264_v25  ;;  %2504 = vrcp.f32 %v1658_v42  ;;  %v1649_v3 = vpop.xlane.xlu0 %1648 }
 0x32d   : > { %1912 = vst.msk [vmem:[%s3483_s28 + $0x88] sm:$0xff] %vm1190_vm1, %v1802_v52  ;;  %2506 = vrcp.f32 %v1649_v3 }
 0x32e   : > { %v2497_v10 = vpop.eup %2496  ;;  %1917 = vst.msk [vmem:[%s3483_s28 + $0xb0] sm:$0xff] %vm1190_vm1, %v1812_v9 }
 0x32f   : > { %v2499_v1 = vpop.eup %2498  ;;  %v1814_v18 = vmul.f32 %v2497_v10, %v3268_v17  ;;  %v1652_v12 = vpop.xlane.xlu1 %1651 }
 0x330   : > { %v1808_v43 = vmul.f32 %v2499_v1, %v3274_v38  ;;  %2508 = vrcp.f32 %v1652_v12  ;;  %v1667_v7 = vpop.xlane.xlu0 %1666 }
 0x331   : > { %1918 = vst.msk [vmem:[%s3483_s28 + $0xb8] sm:$0xff] %vm1190_vm1, %v1814_v18  ;;  %2510 = vrcp.f32 %v1667_v7 }
 0x332   : > { %v2501_v25 = vpop.eup %2500  ;;  %1915 = vst.msk [vmem:[%s3483_s28 + $0xa0] sm:$0xff] %vm1190_vm1, %v1808_v43 }
 0x333   : > { %v2503_v27 = vpop.eup %2502  ;;  %v1810_v32 = vmul.f32 %v2501_v25, %v3278_v23  ;;  %v1670_v56 = vpop.xlane.xlu1 %1669 }
 0x334   : > { %v1820_v49 = vmul.f32 %v2503_v27, %v3284_v46  ;;  %2512 = vrcp.f32 %v1670_v56  ;;  %v1661_v17 = vpop.xlane.xlu0 %1660 }
 0x335   : > { %1916 = vst.msk [vmem:[%s3483_s28 + $0xa8] sm:$0xff] %vm1190_vm1, %v1810_v32  ;;  %2514 = vrcp.f32 %v1661_v17 }
 0x336   : > { %v2505_v38 = vpop.eup %2504  ;;  %1921 = vst.msk [vmem:[%s3483_s28 + $0xd0] sm:$0xff] %vm1190_vm1, %v1820_v49 }
 0x337   : > { %v2507_v26 = vpop.eup %2506  ;;  %v1822_v47 = vmul.f32 %v2505_v38, %v3288_v35  ;;  %v1664_v20 = vpop.xlane.xlu1 %1663 }
 0x338   : > { %v1816_v15 = vmul.f32 %v2507_v26, %v3294_v51  ;;  %2516 = vrcp.f32 %v1664_v20  ;;  %v1679_v23 = vpop.xlane.xlu0 %1678 }
 0x339   : > { %1922 = vst.msk [vmem:[%s3483_s28 + $0xd8] sm:$0xff] %vm1190_vm1, %v1822_v47  ;;  %2518 = vrcp.f32 %v1679_v23 }
 0x33a   : > { %v2509_v46 = vpop.eup %2508  ;;  %1919 = vst.msk [vmem:[%s3483_s28 + $0xc0] sm:$0xff] %vm1190_vm1, %v1816_v15 }
 0x33b   : > { %v2511_v14 = vpop.eup %2510  ;;  %v1818_v5 = vmul.f32 %v2509_v46, %v3298_v40  ;;  %v1682_v62 = vpop.xlane.xlu1 %1681 }
 0x33c   : > { %v1828_v55 = vmul.f32 %v2511_v14, %v3304_v58  ;;  %2520 = vrcp.f32 %v1682_v62  ;;  %v1673_v35 = vpop.xlane.xlu0 %1672  ;;  %v3748_v62 = vld [vmem:[#allocation2_spill] sm:$0xff] }
 0x33d   : > { %1920 = vst.msk [vmem:[%s3483_s28 + $0xc8] sm:$0xff] %vm1190_vm1, %v1818_v5  ;;  %2522 = vrcp.f32 %v1673_v35 }
 0x33e   : > { %v2513_v51 = vpop.eup %2512  ;;  %1925 = vst.msk [vmem:[%s3483_s28 + $0xf0] sm:$0xff] %vm1190_vm1, %v1828_v55 }
 0x33f   : > { %v2515_v22 = vpop.eup %2514  ;;  %v1830_v30 = vmul.f32 %v2513_v51, %v3308_v53  ;;  %v1676_v24 = vpop.xlane.xlu1 %1675  ;;  %v3749_v51 = vld [vmem:[#allocation3_spill] sm:$0xff] }
 0x340   : > { %v1824_v36 = vmul.f32 %v2515_v22, %v3314_v63  ;;  %2524 = vrcp.f32 %v1676_v24  ;;  %v1691_v40 = vpop.xlane.xlu0 %1690  ;;  %v3750_v24 = vld [vmem:[#allocation4_spill] sm:$0xff] }
 0x341   : > { %1926 = vst.msk [vmem:[%s3483_s28 + $0xf8] sm:$0xff] %vm1190_vm1, %v1830_v30  ;;  %2526 = vrcp.f32 %v1691_v40 }
 0x342   : > { %v2517_v58 = vpop.eup %2516  ;;  %1923 = vst.msk [vmem:[%s3483_s28 + $0xe0] sm:$0xff] %vm1190_vm1, %v1824_v36 }
 0x343   : > { %v2519_v54 = vpop.eup %2518  ;;  %v1826_v59 = vmul.f32 %v2517_v58, %v3318_v60  ;;  %v1694_v45 = vpop.xlane.xlu1 %1693  ;;  %v3751_v58 = vld [vmem:[#allocation5_spill] sm:$0xff] }
 0x344   : > { %v1836_v33 = vmul.f32 %v2519_v54, %v3324_v6  ;;  %2528 = vrcp.f32 %v1694_v45  ;;  %v1685_v53 = vpop.xlane.xlu0 %1684 }
 0x345   : > { %1924 = vst.msk [vmem:[%s3483_s28 + $0xe8] sm:$0xff] %vm1190_vm1, %v1826_v59  ;;  %2530 = vrcp.f32 %v1685_v53  ;;  %v3752_v53 = vld [vmem:[#allocation6_spill] sm:$0xff] }
 0x346   : > { %v2521_v63 = vpop.eup %2520  ;;  %1929 = vst.msk [vmem:[%s3483_s28 + $0x110] sm:$0xff] %vm1190_vm1, %v1836_v33 }
 0x347   : > { %v2523_v52 = vpop.eup %2522  ;;  %v1838_v42 = vmul.f32 %v2521_v63, %v3328_v8  ;;  %v1688_v9 = vpop.xlane.xlu1 %1687 }
 0x348   : > { %v1832_v3 = vmul.f32 %v2523_v52, %v3334_v11  ;;  %2532 = vrcp.f32 %v1688_v9  ;;  %v1703_v60 = vpop.xlane.xlu0 %1702 }
 0x349   : > { %1930 = vst.msk [vmem:[%s3483_s28 + $0x118] sm:$0xff] %vm1190_vm1, %v1838_v42  ;;  %2534 = vrcp.f32 %v1703_v60  ;;  %v3753_v42 = vld [vmem:[#allocation7_spill] sm:$0xff] }
 0x34a   : > { %v2525_v6 = vpop.eup %2524  ;;  %1927 = vst.msk [vmem:[%s3483_s28 + $0x100] sm:$0xff] %vm1190_vm1, %v1832_v3 }
 0x34b   : > { %v2527_v10 = vpop.eup %2526  ;;  %v1834_v1 = vmul.f32 %v2525_v6, %v3338_v13  ;;  %v1706_v18 = vpop.xlane.xlu1 %1705 }
 0x34c   : > { %v1844_v12 = vmul.f32 %v2527_v10, %v3344_v21  ;;  %2536 = vrcp.f32 %v1706_v18  ;;  %v1697_v8 = vpop.xlane.xlu0 %1696  ;;  %v3754_v10 = vld [vmem:[#allocation8_spill] sm:$0xff] }
 0x34d   : > { %1928 = vst.msk [vmem:[%s3483_s28 + $0x108] sm:$0xff] %vm1190_vm1, %v1834_v1  ;;  %2538 = vrcp.f32 %v1697_v8 }
 0x34e   : > { %v2529_v11 = vpop.eup %2528  ;;  %1933 = vst.msk [vmem:[%s3483_s28 + $0x130] sm:$0xff] %vm1190_vm1, %v1844_v12  ;;  %v3755_v12 = vld [vmem:[#allocation9_spill] sm:$0xff] }
 0x34f   : > { %v2531_v43 = vpop.eup %2530  ;;  %v1846_v7 = vmul.f32 %v2529_v11, %v3348_v31  ;;  %v1700_v25 = vpop.xlane.xlu1 %1699 }
 0x350   : > { %v1840_v27 = vmul.f32 %v2531_v43, %v3354_v28  ;;  %2540 = vrcp.f32 %v1700_v25  ;;  %v1715_v13 = vpop.xlane.xlu0 %1714  ;;  %v3756_v25 = vld [vmem:[#allocation10_spill] sm:$0xff] }
 0x351   : > { %1934 = vst.msk [vmem:[%s3483_s28 + $0x138] sm:$0xff] %vm1190_vm1, %v1846_v7  ;;  %2542 = vrcp.f32 %v1715_v13 }
 0x352   : > { %v2533_v21 = vpop.eup %2532  ;;  %1931 = vst.msk [vmem:[%s3483_s28 + $0x120] sm:$0xff] %vm1190_vm1, %v1840_v27 }
 0x353   : > { %v2535_v32 = vpop.eup %2534  ;;  %v1842_v56 = vmul.f32 %v2533_v21, %v3358_v41  ;;  %v1718_v49 = vpop.xlane.xlu1 %1717 }
 0x354   : > { %v1852_v17 = vmul.f32 %v2535_v32, %v3364_v39  ;;  %2544 = vrcp.f32 %v1718_v49  ;;  %v1709_v31 = vpop.xlane.xlu0 %1708 }
 0x355   : > { %1932 = vst.msk [vmem:[%s3483_s28 + $0x128] sm:$0xff] %vm1190_vm1, %v1842_v56  ;;  %2546 = vrcp.f32 %v1709_v31 }
 0x356   : > { %v2537_v28 = vpop.eup %2536  ;;  %1937 = vst.msk [vmem:[%s3483_s28 + $0x150] sm:$0xff] %vm1190_vm1, %v1852_v17 }
 0x357   : > { %v2539_v38 = vpop.eup %2538  ;;  %v1854_v26 = vmul.f32 %v2537_v28, %v3368_v61  ;;  %v1712_v47 = vpop.xlane.xlu1 %1711 }
 0x358   : > { %v1848_v20 = vmul.f32 %v2539_v38, %v3374_v48  ;;  %2548 = vrcp.f32 %v1712_v47  ;;  %v1727_v41 = vpop.xlane.xlu0 %1726 }
 0x359   : > { %1938 = vst.msk [vmem:[%s3483_s28 + $0x158] sm:$0xff] %vm1190_vm1, %v1854_v26  ;;  %2550 = vrcp.f32 %v1727_v41 }
 0x35a   : > { %v2541_v39 = vpop.eup %2540  ;;  %1935 = vst.msk [vmem:[%s3483_s28 + $0x140] sm:$0xff] %vm1190_vm1, %v1848_v20 }
 0x35b   : > { %v2543_v15 = vpop.eup %2542  ;;  %v1850_v23 = vmul.f32 %v2541_v39, %v3378_v4  ;;  %v1730_v46 = vpop.xlane.xlu1 %1729 }
 0x35c   : > { %v1860_v14 = vmul.f32 %v2543_v15, %v3384_v34  ;;  %2552 = vrcp.f32 %v1730_v46  ;;  %v1721_v61 = vpop.xlane.xlu0 %1720 }
 0x35d   : > { %1936 = vst.msk [vmem:[%s3483_s28 + $0x148] sm:$0xff] %vm1190_vm1, %v1850_v23  ;;  %2554 = vrcp.f32 %v1721_v61  ;;  %v3757_v61 = vld [vmem:[#allocation11_spill] sm:$0xff] }
 0x35e   : > { %v2545_v48 = vpop.eup %2544  ;;  %1941 = vst.msk [vmem:[%s3483_s28 + $0x170] sm:$0xff] %vm1190_vm1, %v1860_v14 }
 0x35f   : > { %v2547_v5 = vpop.eup %2546  ;;  %v1862_v55 = vmul.f32 %v2545_v48, %v3748_v62  ;;  %v1724_v35 = vpop.xlane.xlu1 %1723 }
 0x360   : > { %v1856_v22 = vmul.f32 %v2547_v5, %v3749_v51  ;;  %2556 = vrcp.f32 %v1724_v35  ;;  %v1739_v4 = vpop.xlane.xlu0 %1738 }
 0x361   : > { %1942 = vst.msk [vmem:[%s3483_s28 + $0x178] sm:$0xff] %vm1190_vm1, %v1862_v55  ;;  %2558 = vrcp.f32 %v1739_v4 }
 0x362   : > { %v2549_v34 = vpop.eup %2548  ;;  %1939 = vst.msk [vmem:[%s3483_s28 + $0x160] sm:$0xff] %vm1190_vm1, %v1856_v22 }
 0x363   : > { %v2551_v30 = vpop.eup %2550  ;;  %v1858_v36 = vmul.f32 %v2549_v34, %v3750_v24  ;;  %v1742_v40 = vpop.xlane.xlu1 %1741 }
 0x364   : > { %v1868_v54 = vmul.f32 %v2551_v30, %v3751_v58  ;;  %2560 = vrcp.f32 %v1742_v40  ;;  %v1733_v59 = vpop.xlane.xlu0 %1732 }
 0x365   : > { %1940 = vst.msk [vmem:[%s3483_s28 + $0x168] sm:$0xff] %vm1190_vm1, %v1858_v36  ;;  %2562 = vrcp.f32 %v1733_v59 }
 0x366   : > { %v2553_v45 = vpop.eup %2552  ;;  %1945 = vst.msk [vmem:[%s3483_s28 + $0x190] sm:$0xff] %vm1190_vm1, %v1868_v54 }
 0x367   : > { %v2555_v33 = vpop.eup %2554  ;;  %v1870_v63 = vmul.f32 %v2553_v45, %v3752_v53  ;;  %v1736_v52 = vpop.xlane.xlu1 %1735 }
 0x368   : > { %v1864_v9 = vmul.f32 %v2555_v33, %v3753_v42  ;;  %2564 = vrcp.f32 %v1736_v52  ;;  %v1751_v3 = vpop.xlane.xlu0 %1750 }
 0x369   : > { %1946 = vst.msk [vmem:[%s3483_s28 + $0x198] sm:$0xff] %vm1190_vm1, %v1870_v63  ;;  %2566 = vrcp.f32 %v1751_v3 }
 0x36a   : > { %v2557_v60 = vpop.eup %2556  ;;  %1943 = vst.msk [vmem:[%s3483_s28 + $0x180] sm:$0xff] %vm1190_vm1, %v1864_v9 }
 0x36b   : > { %v2559_v6 = vpop.eup %2558  ;;  %v1866_v1 = vmul.f32 %v2557_v60, %v3754_v10  ;;  %v1754_v18 = vpop.xlane.xlu1 %1753 }
 0x36c   : > { %v1876_v8 = vmul.f32 %v2559_v6, %v3755_v12  ;;  %2568 = vrcp.f32 %v1754_v18  ;;  %v1745_v11 = vpop.xlane.xlu0 %1744 }
 0x36d   : > { %1944 = vst.msk [vmem:[%s3483_s28 + $0x188] sm:$0xff] %vm1190_vm1, %v1866_v1  ;;  %2570 = vrcp.f32 %v1745_v11 }
 0x36e   : > { %v2561_v43 = vpop.eup %2560  ;;  %1949 = vst.msk [vmem:[%s3483_s28 + $0x1b0] sm:$0xff] %vm1190_vm1, %v1876_v8 }
 0x36f   : > { %v2563_v7 = vpop.eup %2562  ;;  %v1878_v27 = vmul.f32 %v2561_v43, %v3756_v25  ;;  %v1748_v13 = vpop.xlane.xlu1 %1747 }
 0x370   : > { %v1872_v21 = vmul.f32 %v2563_v7, %v3432_v19  ;;  %2572 = vrcp.f32 %v1748_v13 }
 0x371   : > { %1950 = vst.msk [vmem:[%s3483_s28 + $0x1b8] sm:$0xff] %vm1190_vm1, %v1878_v27 }
 0x372   : > { %v2565_v32 = vpop.eup %2564  ;;  %1947 = vst.msk [vmem:[%s3483_s28 + $0x1a0] sm:$0xff] %vm1190_vm1, %v1872_v21 }
 0x373   : > { %v2567_v56 = vpop.eup %2566  ;;  %v1874_v49 = vmul.f32 %v2565_v32, %v3437_v2 }
 0x374   : > { %v1884_v17 = vmul.f32 %v2567_v56, %v3444_v37  ;;  %v1757_v31 = vpop.xlane.xlu0 %1756 }
 0x375   : > { %1948 = vst.msk [vmem:[%s3483_s28 + $0x1a8] sm:$0xff] %vm1190_vm1, %v1874_v49  ;;  %2574 = vrcp.f32 %v1757_v31  ;;  %v1760_v28 = vpop.xlane.xlu1 %1759 }
 0x376   : > { %v2569_v19 = vpop.eup %2568  ;;  %1953 = vst.msk [vmem:[%s3483_s28 + $0x1d0] sm:$0xff] %vm1190_vm1, %v1884_v17  ;;  %2576 = vrcp.f32 %v1760_v28 }
 0x377   : > { %v2571_v38 = vpop.eup %2570  ;;  %v1886_v26 = vmul.f32 %v2569_v19, %v3448_v16 }
 0x378   : > { %v1880_v47 = vmul.f32 %v2571_v38, %v3452_v57  ;;  %v1763_v2 = vpop.xlane.xlu0 %1762 }
 0x379   : > { %1954 = vst.msk [vmem:[%s3483_s28 + $0x1d8] sm:$0xff] %vm1190_vm1, %v1886_v26  ;;  %2578 = vrcp.f32 %v1763_v2  ;;  %v1766_v37 = vpop.xlane.xlu1 %1765 }
 0x37a   : > { %v2573_v20 = vpop.eup %2572  ;;  %1951 = vst.msk [vmem:[%s3483_s28 + $0x1c0] sm:$0xff] %vm1190_vm1, %v1880_v47  ;;  %2580 = vrcp.f32 %v1766_v37 }
 0x37b   : > { %v1882_v41 = vmul.f32 %v2573_v20, %v3456_v0 }
 0x37d   : > { %1952 = vst.msk [vmem:[%s3483_s28 + $0x1c8] sm:$0xff] %vm1190_vm1, %v1882_v41 }
 0x37f   : > { %v2575_v39 = vpop.eup %2574 }
 0x380   : > { %v2577_v16 = vpop.eup %2576  ;;  %v1888_v57 = vmul.f32 %v2575_v39, %v3462_v29 }
 0x381   : > { %v1890_v15 = vmul.f32 %v2577_v16, %v3464_v44 }
 0x382   : > { %1955 = vst.msk [vmem:[%s3483_s28 + $0x1e0] sm:$0xff] %vm1190_vm1, %v1888_v57 }
 0x383   : > { %v2579_v23 = vpop.eup %2578  ;;  %1956 = vst.msk [vmem:[%s3483_s28 + $0x1e8] sm:$0xff] %vm1190_vm1, %v1890_v15 }
 0x384   : > { %v2581_v46 = vpop.eup %2580  ;;  %v1892_v14 = vmul.f32 %v2579_v23, %v3468_v50 }
 0x385   : > { %v1894_v48 = vmul.f32 %v2581_v46, %v3757_v61 }
 0x386   : > { %1957 = vst.msk [vmem:[%s3483_s28 + $0x1f0] sm:$0xff] %vm1190_vm1, %v1892_v14 }
 0x387   : > { %1958 = vst.msk [vmem:[%s3483_s28 + $0x1f8] sm:$0xff] %vm1190_vm1, %v1894_v48 }
 0x388 PF: > { %s15_s18 = sadd.s32 1, %s2588_s18  }
 0x389   : > { %p12_p4 = scmp.ge.s32.totalorder %s15_s18, 4  }
 0x38b   :  { %14 = sbr.rel (!%p12_p4) target bundleno = 1 (0x1), region = 70 }

</bundles_post_ra>
